<compile_context>
chip_gen: v7x
topology: tpu7x:2x2x1
jax: 0.10.0
libtpu: 0.0.40
codegen_flags: <defaults>
</compile_context>

<pallas_src>
import numpy as np

import jax
import jax.numpy as jnp
from jax.experimental import pallas as pl
from jax.experimental.pallas import tpu as pltpu

LANE = 128  # TPU lane width; every per-kh slab chunk is padded to 128 lanes.


# ----------------------------------------------------------------------------
# One-time host-side parameter preparation (all layout plumbing lives here).
# ----------------------------------------------------------------------------
def prepare_lenet(params, batch, image_hw=32):
    """Repack PyTorch-layout LeNet params into the fused kernel's operands."""
    conv1_w = np.asarray(params["conv1_w"], np.float32)   # (6, 3, 5, 5)
    conv1_b = np.asarray(params["conv1_b"], np.float32)
    conv2_w = np.asarray(params["conv2_w"], np.float32)   # (16, 6, 5, 5)
    conv2_b = np.asarray(params["conv2_b"], np.float32)
    fc1_w = np.asarray(params["fc1_w"], np.float32)        # (120, 400)
    fc2_w = np.asarray(params["fc2_w"], np.float32)        # (84, 120)
    fc3_w = np.asarray(params["fc3_w"], np.float32)        # (nc, 84)

    oc1, ic1, k1, _ = conv1_w.shape
    oc2, ic2, k2, _ = conv2_w.shape
    B = batch
    H1 = W1 = image_hw
    OH1 = H1 - k1 + 1            # 28
    PH1 = OH1 // 2               # 14
    OH2 = PH1 - k2 + 1           # 10
    PH2 = OH2 // 2               # 5
    assert ic1 * W1 <= LANE and ic2 * PH1 <= LANE and oc2 * PH2 <= LANE

    ow1 = np.arange(OH1)
    ow2 = np.arange(OH2)

    # conv1 flattened band weights: contraction index = kh*128 + ic*W1 + w.
    m1f = np.zeros((k1 * LANE, oc1 * OH1), np.float32)
    for kh in range(k1):
        for kw in range(k1):
            for ic in range(ic1):
                for oc in range(oc1):
                    m1f[kh * LANE + ic * W1 + ow1 + kw, oc * OH1 + ow1] = \
                        conv1_w[oc, ic, kh, kw]

    # conv2 flattened band weights: contraction index = kh*128 + ic*PH1 + w.
    m2f = np.zeros((k2 * LANE, oc2 * OH2), np.float32)
    for kh in range(k2):
        for kw in range(k2):
            for ic in range(ic2):
                for oc in range(oc2):
                    m2f[kh * LANE + ic * PH1 + ow2 + kw, oc * OH2 + ow2] = \
                        conv2_w[oc, ic, kh, kw]

    # pool1 stacked even/odd row selector (output rows = b*PH1 + ph).
    sp1s = np.zeros((2 * B * PH1, B * OH1), np.float32)
    for b in range(B):
        for ph in range(PH1):
            sp1s[b * PH1 + ph, b * OH1 + 2 * ph] = 1.0
            sp1s[B * PH1 + b * PH1 + ph, b * OH1 + 2 * ph + 1] = 1.0

    # pool1 stacked even/odd column selector (odd half starts at lane 128).
    cp1s = np.zeros((oc1 * OH1, 2 * LANE), np.float32)
    for c in range(oc1):
        for pw in range(PH1):
            cp1s[c * OH1 + 2 * pw, c * PH1 + pw] = 1.0
            cp1s[c * OH1 + 2 * pw + 1, LANE + c * PH1 + pw] = 1.0

    # pool2 stacked row selector; output rows ordered ph*B + b so fc1 can take
    # contiguous (B, 128) sublane slices.
    sp2s = np.zeros((2 * B * PH2, B * OH2), np.float32)
    for b in range(B):
        for ph in range(PH2):
            sp2s[ph * B + b, b * OH2 + 2 * ph] = 1.0
            sp2s[B * PH2 + ph * B + b, b * OH2 + 2 * ph + 1] = 1.0

    cp2s = np.zeros((oc2 * OH2, 2 * LANE), np.float32)
    for c in range(oc2):
        for pw in range(PH2):
            cp2s[c * OH2 + 2 * pw, c * PH2 + pw] = 1.0
            cp2s[c * OH2 + 2 * pw + 1, LANE + c * PH2 + pw] = 1.0

    # fc1: fold PyTorch's (C, H, W) flatten order; lanes of p2 are c*PW2 + w.
    n1 = fc1_w.shape[0]
    w4 = fc1_w.reshape(n1, oc2, PH2, PH2)
    w1f = np.zeros((PH2, LANE, n1), np.float32)
    w1f[:, :oc2 * PH2, :] = np.transpose(w4, (2, 1, 3, 0)).reshape(
        PH2, oc2 * PH2, n1)

    bf16 = jnp.bfloat16
    f32 = jnp.float32
    return {
        "m1f": jnp.asarray(m1f, bf16),
        "b1c": jnp.asarray(np.repeat(conv1_b, OH1)[None, :], f32),
        "sp1s": jnp.asarray(sp1s, bf16),
        "cp1s": jnp.asarray(cp1s, bf16),
        "m2f": jnp.asarray(m2f, bf16),
        "b2c": jnp.asarray(np.repeat(conv2_b, OH2)[None, :], f32),
        "sp2s": jnp.asarray(sp2s, bf16),
        "cp2s": jnp.asarray(cp2s, bf16),
        "w1f": jnp.asarray(w1f, bf16),
        "fb1": jnp.asarray(np.asarray(params["fc1_b"], np.float32)[None, :], f32),
        "w2": jnp.asarray(np.ascontiguousarray(fc2_w.T), bf16),
        "fb2": jnp.asarray(np.asarray(params["fc2_b"], np.float32)[None, :], f32),
        "w3": jnp.asarray(np.ascontiguousarray(fc3_w.T), bf16),
        "fb3": jnp.asarray(np.asarray(params["fc3_b"], np.float32)[None, :], f32),
    }


# ----------------------------------------------------------------------------
# The fused Pallas kernel (whole forward pass, single grid point).
# ----------------------------------------------------------------------------
def _lenet_kernel(x_ref, m1f_ref, b1c_ref, sp1s_ref, cp1s_ref,
                  m2f_ref, b2c_ref, sp2s_ref, cp2s_ref,
                  w1f_ref, fb1_ref, w2_ref, fb2_ref, w3_ref, fb3_ref,
                  out_ref, slab1_ref, slab2_ref):
    f32, bf16 = jnp.float32, jnp.bfloat16
    B, H1, LANES = x_ref.shape
    OH1 = slab1_ref.shape[0] // B          # 28
    K1 = slab1_ref.shape[1] // LANES       # 5
    PH1 = OH1 // 2                         # 14
    OH2 = slab2_ref.shape[0] // B          # 10
    K2 = slab2_ref.shape[1] // LANES       # 5
    PH2 = OH2 // 2                         # 5

    def mm(a, b):
        # bf16 x bf16 single-pass MXU dot with f32 accumulation.
        return jnp.dot(a.astype(bf16), b.astype(bf16),
                       preferred_element_type=f32)

    # conv1 + bias + ReLU: build the shifted-row slab (rows = b*OH1 + oh,
    # lanes = kh*128 + ic*W1 + w), then ONE dot contracts kh x ic x kw.
    for b in range(B):
        xb = x_ref[b]                                         # (H1, 128) f32
        for kh in range(K1):
            slab1_ref[pl.ds(b * OH1, OH1), pl.ds(kh * LANES, LANES)] = \
                xb[kh:kh + OH1, :].astype(bf16)
    a1 = jnp.maximum(mm(slab1_ref[...], m1f_ref[...]) + b1c_ref[...], 0.0)

    # pool1 (2x2 / stride 2): stacked even/odd row-selector dot, VPU max of
    # the two row halves, stacked column-selector dot, VPU max of lane halves.
    hp = B * PH1
    r1 = mm(sp1s_ref[...], a1)                                # (2*hp, 168)
    rmax1 = jnp.maximum(r1[:hp, :], r1[hp:, :])
    c1 = mm(rmax1, cp1s_ref[...])                             # (hp, 256)
    p1 = jnp.maximum(c1[:, :LANES], c1[:, LANES:])            # (hp, 128)

    # conv2 + bias + ReLU: same shifted-row slab trick, one dot (K = 640).
    for b in range(B):
        for kh in range(K2):
            slab2_ref[pl.ds(b * OH2, OH2), pl.ds(kh * LANES, LANES)] = \
                p1[b * PH1 + kh:b * PH1 + kh + OH2, :].astype(bf16)
    a2 = jnp.maximum(mm(slab2_ref[...], m2f_ref[...]) + b2c_ref[...], 0.0)

    # pool2 (output rows ordered ph*B + b for contiguous fc1 slices).
    hq = B * PH2
    r2 = mm(sp2s_ref[...], a2)
    rmax2 = jnp.maximum(r2[:hq, :], r2[hq:, :])
    c2 = mm(rmax2, cp2s_ref[...])
    p2 = jnp.maximum(c2[:, :LANES], c2[:, LANES:])            # (hq, 128)

    # fc1 + ReLU: the PyTorch (C,H,W) flatten permutation is folded into w1f;
    # contract the PH2 pooled-row groups with PH2 dots of (B,128)x(128,120).
    acc = mm(p2[0:B, :], w1f_ref[0])
    for ph in range(1, PH2):
        acc = acc + mm(p2[ph * B:(ph + 1) * B, :], w1f_ref[ph])
    h = jnp.maximum(acc + fb1_ref[...], 0.0)

    # fc2 + ReLU, fc3 (logits, no ReLU).
    h = jnp.maximum(mm(h, w2_ref[...]) + fb2_ref[...], 0.0)
    out_ref[...] = mm(h, w3_ref[...]) + fb3_ref[...]


def _full_spec(shape):
    # Whole-array block (no grid): every operand is tiny and lives in VMEM.
    return pl.BlockSpec(shape, lambda: (0,) * len(shape))


@jax.jit
def lenet_forward(prep, x):
    """x: (B, 3, 32, 32) float32 NCHW -> (B, num_classes) float32 logits."""
    B, IC, H, W = x.shape
    K1 = prep["m1f"].shape[0] // LANE
    OH1 = H - K1 + 1
    PH1 = OH1 // 2
    K2 = prep["m2f"].shape[0] // LANE
    OH2 = PH1 - K2 + 1
    num_classes = prep["fb3"].shape[1]

    # One-off layout plumbing outside the hot path: NCHW -> (B, H, IC*W),
    # lane-padded to 128 so every in-kernel slab chunk is 128-aligned.
    xs = jnp.transpose(x, (0, 2, 1, 3)).reshape(B, H, IC * W)
    xs = jnp.pad(xs, ((0, 0), (0, 0), (0, LANE - IC * W)))

    operands = (xs, prep["m1f"], prep["b1c"], prep["sp1s"], prep["cp1s"],
                prep["m2f"], prep["b2c"], prep["sp2s"], prep["cp2s"],
                prep["w1f"], prep["fb1"], prep["w2"], prep["fb2"],
                prep["w3"], prep["fb3"])

    return pl.pallas_call(
        _lenet_kernel,
        out_shape=jax.ShapeDtypeStruct((B, num_classes), jnp.float32),
        in_specs=[_full_spec(op.shape) for op in operands],
        out_specs=_full_spec((B, num_classes)),
        scratch_shapes=[
            pltpu.VMEM((B * OH1, K1 * LANE), jnp.bfloat16),  # conv1 slab
            pltpu.VMEM((B * OH2, K2 * LANE), jnp.bfloat16),  # conv2 slab
        ],
    )(*operands)


# ----------------------------------------------------------------------------
# Parameter init (PyTorch-style) and a pure-XLA reference for verification.
# ----------------------------------------------------------------------------
def init_lenet_params(key, num_classes=10):
    ks = jax.random.split(key, 10)

    def u(k, shape, fan_in):
        bound = 1.0 / jnp.sqrt(fan_in)
        return jax.random.uniform(k, shape, jnp.float32, -bound, bound)

    return {
        "conv1_w": u(ks[0], (6, 3, 5, 5), 3 * 5 * 5),
        "conv1_b": u(ks[1], (6,), 3 * 5 * 5),
        "conv2_w": u(ks[2], (16, 6, 5, 5), 6 * 5 * 5),
        "conv2_b": u(ks[3], (16,), 6 * 5 * 5),
        "fc1_w": u(ks[4], (120, 400), 400),
        "fc1_b": u(ks[5], (120,), 400),
        "fc2_w": u(ks[6], (84, 120), 120),
        "fc2_b": u(ks[7], (84,), 120),
        "fc3_w": u(ks[8], (num_classes, 84), 84),
        "fc3_b": u(ks[9], (num_classes,), 84),
    }


def lenet_reference(params, x):
    """Pure-XLA reference with the exact PyTorch-module semantics."""
    hi = jax.lax.Precision.HIGHEST
    dn = ("NCHW", "OIHW", "NCHW")
    y = jax.lax.conv_general_dilated(x, params["conv1_w"], (1, 1), "VALID",
                                     dimension_numbers=dn, precision=hi)
    y = jnp.maximum(y + params["conv1_b"][None, :, None, None], 0.0)
    y = jax.lax.reduce_window(y, -jnp.inf, jax.lax.max,
                              (1, 1, 2, 2), (1, 1, 2, 2), "VALID")
    y = jax.lax.conv_general_dilated(y, params["conv2_w"], (1, 1), "VALID",
                                     dimension_numbers=dn, precision=hi)
    y = jnp.maximum(y + params["conv2_b"][None, :, None, None], 0.0)
    y = jax.lax.reduce_window(y, -jnp.inf, jax.lax.max,
                              (1, 1, 2, 2), (1, 1, 2, 2), "VALID")
    y = y.reshape(y.shape[0], -1)
    y = jnp.maximum(jnp.dot(y, params["fc1_w"].T, precision=hi) + params["fc1_b"], 0.0)
    y = jnp.maximum(jnp.dot(y, params["fc2_w"].T, precision=hi) + params["fc2_b"], 0.0)
    return jnp.dot(y, params["fc3_w"].T, precision=hi) + params["fc3_b"]


if __name__ == "__main__":
    key = jax.random.PRNGKey(0)
    pkey, xkey = jax.random.split(key)
    params = init_lenet_params(pkey, num_classes=10)
    # LeNet's fc1 (16*5*5 inputs) pins the input shape to (B, 3, 32, 32).
    x = jax.random.normal(xkey, (2, 3, 32, 32), dtype=jnp.float32)

    prep = prepare_lenet(params, batch=x.shape[0], image_hw=x.shape[2])
    out = lenet_forward(prep, x)
    jax.block_until_ready(out)
    assert out.shape == (2, 10)

    # Verify against the pure-XLA reference of the PyTorch module
    # (bf16 MXU operands with f32 accumulation -> keep the 2e-2 tolerance).
    ref = lenet_reference(params, x)
    np.testing.assert_allclose(np.asarray(out), np.asarray(ref),
                               rtol=2e-2, atol=2e-2)
    print("KERNEL_OK")
</pallas_src>

<mosaic_0001>
module attributes {stable_mosaic.version = 11 : i64} {
  func.func @_lenet_kernel(%arg0: memref<2x32x128xf32, #tpu.memory_space<vmem>>, %arg1: memref<640x168xbf16, #tpu.memory_space<vmem>>, %arg2: memref<1x168xf32, #tpu.memory_space<vmem>>, %arg3: memref<56x56xbf16, #tpu.memory_space<vmem>>, %arg4: memref<168x256xbf16, #tpu.memory_space<vmem>>, %arg5: memref<640x160xbf16, #tpu.memory_space<vmem>>, %arg6: memref<1x160xf32, #tpu.memory_space<vmem>>, %arg7: memref<20x20xbf16, #tpu.memory_space<vmem>>, %arg8: memref<160x256xbf16, #tpu.memory_space<vmem>>, %arg9: memref<5x128x120xbf16, #tpu.memory_space<vmem>>, %arg10: memref<1x120xf32, #tpu.memory_space<vmem>>, %arg11: memref<120x84xbf16, #tpu.memory_space<vmem>>, %arg12: memref<1x84xf32, #tpu.memory_space<vmem>>, %arg13: memref<84x10xbf16, #tpu.memory_space<vmem>>, %arg14: memref<1x10xf32, #tpu.memory_space<vmem>>, %arg15: memref<2x10xf32, #tpu.memory_space<vmem>>, %arg16: memref<56x640xbf16, #tpu.memory_space<vmem>>, %arg17: memref<20x640xbf16, #tpu.memory_space<vmem>>) attributes {dimension_semantics = [], scalar_prefetch = 0 : i64, scratch_operands = 2 : i64, tpu.core_type = #tpu.core_type<tc>} {
    %c0 = arith.constant 0 : index
    %c0_0 = arith.constant 0 : index
    %c0_1 = arith.constant 0 : index
    %0 = vector.load %arg0[%c0, %c0_0, %c0_1] : memref<2x32x128xf32, #tpu.memory_space<vmem>>, vector<1x32x128xf32>
    %1 = vector.shape_cast %0 : vector<1x32x128xf32> to vector<32x128xf32>
    %2 = vector.extract_strided_slice %1 {offsets = [0, 0], sizes = [28, 128], strides = [1, 1]} : vector<32x128xf32> to vector<28x128xf32>
    %3 = arith.truncf %2 : vector<28x128xf32> to vector<28x128xbf16>
    %c0_2 = arith.constant 0 : index
    %c0_3 = arith.constant 0 : index
    %4 = vector.load %arg16[%c0_2, %c0_3] : memref<56x640xbf16, #tpu.memory_space<vmem>>, vector<28x128xbf16>
    tpu.vector_store %arg16[%c0_2, %c0_3], %3 {strides = array<i32>} : memref<56x640xbf16, #tpu.memory_space<vmem>>, vector<28x128xbf16>,
    %5 = vector.extract_strided_slice %1 {offsets = [1, 0], sizes = [28, 128], strides = [1, 1]} : vector<32x128xf32> to vector<28x128xf32>
    %6 = arith.truncf %5 : vector<28x128xf32> to vector<28x128xbf16>
    %c0_4 = arith.constant 0 : index
    %c128 = arith.constant 128 : index
    %7 = vector.load %arg16[%c0_4, %c128] : memref<56x640xbf16, #tpu.memory_space<vmem>>, vector<28x128xbf16>
    tpu.vector_store %arg16[%c0_4, %c128], %6 {strides = array<i32>} : memref<56x640xbf16, #tpu.memory_space<vmem>>, vector<28x128xbf16>,
    %8 = vector.extract_strided_slice %1 {offsets = [2, 0], sizes = [28, 128], strides = [1, 1]} : vector<32x128xf32> to vector<28x128xf32>
    %9 = arith.truncf %8 : vector<28x128xf32> to vector<28x128xbf16>
    %c0_5 = arith.constant 0 : index
    %c256 = arith.constant 256 : index
    %10 = vector.load %arg16[%c0_5, %c256] : memref<56x640xbf16, #tpu.memory_space<vmem>>, vector<28x128xbf16>
    tpu.vector_store %arg16[%c0_5, %c256], %9 {strides = array<i32>} : memref<56x640xbf16, #tpu.memory_space<vmem>>, vector<28x128xbf16>,
    %11 = vector.extract_strided_slice %1 {offsets = [3, 0], sizes = [28, 128], strides = [1, 1]} : vector<32x128xf32> to vector<28x128xf32>
    %12 = arith.truncf %11 : vector<28x128xf32> to vector<28x128xbf16>
    %c0_6 = arith.constant 0 : index
    %c384 = arith.constant 384 : index
    %13 = vector.load %arg16[%c0_6, %c384] : memref<56x640xbf16, #tpu.memory_space<vmem>>, vector<28x128xbf16>
    tpu.vector_store %arg16[%c0_6, %c384], %12 {strides = array<i32>} : memref<56x640xbf16, #tpu.memory_space<vmem>>, vector<28x128xbf16>,
    %14 = vector.extract_strided_slice %1 {offsets = [4, 0], sizes = [28, 128], strides = [1, 1]} : vector<32x128xf32> to vector<28x128xf32>
    %15 = arith.truncf %14 : vector<28x128xf32> to vector<28x128xbf16>
    %c0_7 = arith.constant 0 : index
    %c512 = arith.constant 512 : index
    %16 = vector.load %arg16[%c0_7, %c512] : memref<56x640xbf16, #tpu.memory_space<vmem>>, vector<28x128xbf16>
    tpu.vector_store %arg16[%c0_7, %c512], %15 {strides = array<i32>} : memref<56x640xbf16, #tpu.memory_space<vmem>>, vector<28x128xbf16>,
    %c1 = arith.constant 1 : index
    %c0_8 = arith.constant 0 : index
    %c0_9 = arith.constant 0 : index
    %17 = vector.load %arg0[%c1, %c0_8, %c0_9] : memref<2x32x128xf32, #tpu.memory_space<vmem>>, vector<1x32x128xf32>
    %18 = vector.shape_cast %17 : vector<1x32x128xf32> to vector<32x128xf32>
    %19 = vector.extract_strided_slice %18 {offsets = [0, 0], sizes = [28, 128], strides = [1, 1]} : vector<32x128xf32> to vector<28x128xf32>
    %20 = arith.truncf %19 : vector<28x128xf32> to vector<28x128xbf16>
    %c28 = arith.constant 28 : index
    %c0_10 = arith.constant 0 : index
    %21 = vector.load %arg16[%c28, %c0_10] : memref<56x640xbf16, #tpu.memory_space<vmem>>, vector<28x128xbf16>
    tpu.vector_store %arg16[%c28, %c0_10], %20 {strides = array<i32>} : memref<56x640xbf16, #tpu.memory_space<vmem>>, vector<28x128xbf16>,
    %22 = vector.extract_strided_slice %18 {offsets = [1, 0], sizes = [28, 128], strides = [1, 1]} : vector<32x128xf32> to vector<28x128xf32>
    %23 = arith.truncf %22 : vector<28x128xf32> to vector<28x128xbf16>
    %c28_11 = arith.constant 28 : index
    %c128_12 = arith.constant 128 : index
    %24 = vector.load %arg16[%c28_11, %c128_12] : memref<56x640xbf16, #tpu.memory_space<vmem>>, vector<28x128xbf16>
    tpu.vector_store %arg16[%c28_11, %c128_12], %23 {strides = array<i32>} : memref<56x640xbf16, #tpu.memory_space<vmem>>, vector<28x128xbf16>,
    %25 = vector.extract_strided_slice %18 {offsets = [2, 0], sizes = [28, 128], strides = [1, 1]} : vector<32x128xf32> to vector<28x128xf32>
    %26 = arith.truncf %25 : vector<28x128xf32> to vector<28x128xbf16>
    %c28_13 = arith.constant 28 : index
    %c256_14 = arith.constant 256 : index
    %27 = vector.load %arg16[%c28_13, %c256_14] : memref<56x640xbf16, #tpu.memory_space<vmem>>, vector<28x128xbf16>
    tpu.vector_store %arg16[%c28_13, %c256_14], %26 {strides = array<i32>} : memref<56x640xbf16, #tpu.memory_space<vmem>>, vector<28x128xbf16>,
    %28 = vector.extract_strided_slice %18 {offsets = [3, 0], sizes = [28, 128], strides = [1, 1]} : vector<32x128xf32> to vector<28x128xf32>
    %29 = arith.truncf %28 : vector<28x128xf32> to vector<28x128xbf16>
    %c28_15 = arith.constant 28 : index
    %c384_16 = arith.constant 384 : index
    %30 = vector.load %arg16[%c28_15, %c384_16] : memref<56x640xbf16, #tpu.memory_space<vmem>>, vector<28x128xbf16>
    tpu.vector_store %arg16[%c28_15, %c384_16], %29 {strides = array<i32>} : memref<56x640xbf16, #tpu.memory_space<vmem>>, vector<28x128xbf16>,
    %31 = vector.extract_strided_slice %18 {offsets = [4, 0], sizes = [28, 128], strides = [1, 1]} : vector<32x128xf32> to vector<28x128xf32>
    %32 = arith.truncf %31 : vector<28x128xf32> to vector<28x128xbf16>
    %c28_17 = arith.constant 28 : index
    %c512_18 = arith.constant 512 : index
    %33 = vector.load %arg16[%c28_17, %c512_18] : memref<56x640xbf16, #tpu.memory_space<vmem>>, vector<28x128xbf16>
    tpu.vector_store %arg16[%c28_17, %c512_18], %32 {strides = array<i32>} : memref<56x640xbf16, #tpu.memory_space<vmem>>, vector<28x128xbf16>,
    %c0_19 = arith.constant 0 : index
    %c0_20 = arith.constant 0 : index
    %34 = vector.load %arg16[%c0_19, %c0_20] : memref<56x640xbf16, #tpu.memory_space<vmem>>, vector<56x640xbf16>
    %c0_21 = arith.constant 0 : index
    %c0_22 = arith.constant 0 : index
    %35 = vector.load %arg1[%c0_21, %c0_22] : memref<640x168xbf16, #tpu.memory_space<vmem>>, vector<640x168xbf16>
    %cst = arith.constant dense<0.000000e+00> : vector<56x168xf32>
    %36 = tpu.matmul %34, %35, %cst {dimension_numbers = #tpu.dot_dimension_numbers<[1], [0], [0], [1], [0, 0, 1, 1], [], []>} : vector<56x640xbf16>, vector<640x168xbf16>, vector<56x168xf32> -> vector<56x168xf32>
    %c0_23 = arith.constant 0 : index
    %c0_24 = arith.constant 0 : index
    %37 = vector.load %arg2[%c0_23, %c0_24] : memref<1x168xf32, #tpu.memory_space<vmem>>, vector<1x168xf32>
    %38 = vector.broadcast %37 : vector<1x168xf32> to vector<56x168xf32>
    %39 = arith.addf %36, %38 : vector<56x168xf32>
    %cst_25 = arith.constant 0.000000e+00 : f32
    %40 = vector.broadcast %cst_25 : f32 to vector<56x168xf32>
    %41 = arith.maximumf %39, %40 : vector<56x168xf32>
    %c0_26 = arith.constant 0 : index
    %c0_27 = arith.constant 0 : index
    %42 = vector.load %arg3[%c0_26, %c0_27] : memref<56x56xbf16, #tpu.memory_space<vmem>>, vector<56x56xbf16>
    %43 = arith.truncf %41 : vector<56x168xf32> to vector<56x168xbf16>
    %cst_28 = arith.constant dense<0.000000e+00> : vector<56x168xf32>
    %44 = tpu.matmul %42, %43, %cst_28 {dimension_numbers = #tpu.dot_dimension_numbers<[1], [0], [0], [1], [0, 0, 1, 1], [], []>} : vector<56x56xbf16>, vector<56x168xbf16>, vector<56x168xf32> -> vector<56x168xf32>
    %45 = vector.extract_strided_slice %44 {offsets = [0, 0], sizes = [28, 168], strides = [1, 1]} : vector<56x168xf32> to vector<28x168xf32>
    %46 = vector.extract_strided_slice %44 {offsets = [28, 0], sizes = [28, 168], strides = [1, 1]} : vector<56x168xf32> to vector<28x168xf32>
    %47 = arith.maximumf %45, %46 : vector<28x168xf32>
    %c0_29 = arith.constant 0 : index
    %c0_30 = arith.constant 0 : index
    %48 = vector.load %arg4[%c0_29, %c0_30] : memref<168x256xbf16, #tpu.memory_space<vmem>>, vector<168x256xbf16>
    %49 = arith.truncf %47 : vector<28x168xf32> to vector<28x168xbf16>
    %cst_31 = arith.constant dense<0.000000e+00> : vector<28x256xf32>
    %50 = tpu.matmul %49, %48, %cst_31 {dimension_numbers = #tpu.dot_dimension_numbers<[1], [0], [0], [1], [0, 0, 1, 1], [], []>} : vector<28x168xbf16>, vector<168x256xbf16>, vector<28x256xf32> -> vector<28x256xf32>
    %51 = vector.extract_strided_slice %50 {offsets = [0, 0], sizes = [28, 128], strides = [1, 1]} : vector<28x256xf32> to vector<28x128xf32>
    %52 = vector.extract_strided_slice %50 {offsets = [0, 128], sizes = [28, 128], strides = [1, 1]} : vector<28x256xf32> to vector<28x128xf32>
    %53 = arith.maximumf %51, %52 : vector<28x128xf32>
    %54 = vector.extract_strided_slice %53 {offsets = [0, 0], sizes = [10, 128], strides = [1, 1]} : vector<28x128xf32> to vector<10x128xf32>
    %55 = arith.truncf %54 : vector<10x128xf32> to vector<10x128xbf16>
    %c0_32 = arith.constant 0 : index
    %c0_33 = arith.constant 0 : index
    %56 = vector.load %arg17[%c0_32, %c0_33] : memref<20x640xbf16, #tpu.memory_space<vmem>>, vector<10x128xbf16>
    tpu.vector_store %arg17[%c0_32, %c0_33], %55 {strides = array<i32>} : memref<20x640xbf16, #tpu.memory_space<vmem>>, vector<10x128xbf16>,
    %57 = vector.extract_strided_slice %53 {offsets = [1, 0], sizes = [10, 128], strides = [1, 1]} : vector<28x128xf32> to vector<10x128xf32>
    %58 = arith.truncf %57 : vector<10x128xf32> to vector<10x128xbf16>
    %c0_34 = arith.constant 0 : index
    %c128_35 = arith.constant 128 : index
    %59 = vector.load %arg17[%c0_34, %c128_35] : memref<20x640xbf16, #tpu.memory_space<vmem>>, vector<10x128xbf16>
    tpu.vector_store %arg17[%c0_34, %c128_35], %58 {strides = array<i32>} : memref<20x640xbf16, #tpu.memory_space<vmem>>, vector<10x128xbf16>,
    %60 = vector.extract_strided_slice %53 {offsets = [2, 0], sizes = [10, 128], strides = [1, 1]} : vector<28x128xf32> to vector<10x128xf32>
    %61 = arith.truncf %60 : vector<10x128xf32> to vector<10x128xbf16>
    %c0_36 = arith.constant 0 : index
    %c256_37 = arith.constant 256 : index
    %62 = vector.load %arg17[%c0_36, %c256_37] : memref<20x640xbf16, #tpu.memory_space<vmem>>, vector<10x128xbf16>
    tpu.vector_store %arg17[%c0_36, %c256_37], %61 {strides = array<i32>} : memref<20x640xbf16, #tpu.memory_space<vmem>>, vector<10x128xbf16>,
    %63 = vector.extract_strided_slice %53 {offsets = [3, 0], sizes = [10, 128], strides = [1, 1]} : vector<28x128xf32> to vector<10x128xf32>
    %64 = arith.truncf %63 : vector<10x128xf32> to vector<10x128xbf16>
    %c0_38 = arith.constant 0 : index
    %c384_39 = arith.constant 384 : index
    %65 = vector.load %arg17[%c0_38, %c384_39] : memref<20x640xbf16, #tpu.memory_space<vmem>>, vector<10x128xbf16>
    tpu.vector_store %arg17[%c0_38, %c384_39], %64 {strides = array<i32>} : memref<20x640xbf16, #tpu.memory_space<vmem>>, vector<10x128xbf16>,
    %66 = vector.extract_strided_slice %53 {offsets = [4, 0], sizes = [10, 128], strides = [1, 1]} : vector<28x128xf32> to vector<10x128xf32>
    %67 = arith.truncf %66 : vector<10x128xf32> to vector<10x128xbf16>
    %c0_40 = arith.constant 0 : index
    %c512_41 = arith.constant 512 : index
    %68 = vector.load %arg17[%c0_40, %c512_41] : memref<20x640xbf16, #tpu.memory_space<vmem>>, vector<10x128xbf16>
    tpu.vector_store %arg17[%c0_40, %c512_41], %67 {strides = array<i32>} : memref<20x640xbf16, #tpu.memory_space<vmem>>, vector<10x128xbf16>,
    %69 = vector.extract_strided_slice %53 {offsets = [14, 0], sizes = [10, 128], strides = [1, 1]} : vector<28x128xf32> to vector<10x128xf32>
    %70 = arith.truncf %69 : vector<10x128xf32> to vector<10x128xbf16>
    %c10 = arith.constant 10 : index
    %c0_42 = arith.constant 0 : index
    %71 = vector.load %arg17[%c10, %c0_42] : memref<20x640xbf16, #tpu.memory_space<vmem>>, vector<10x128xbf16>
    tpu.vector_store %arg17[%c10, %c0_42], %70 {strides = array<i32>} : memref<20x640xbf16, #tpu.memory_space<vmem>>, vector<10x128xbf16>,
    %72 = vector.extract_strided_slice %53 {offsets = [15, 0], sizes = [10, 128], strides = [1, 1]} : vector<28x128xf32> to vector<10x128xf32>
    %73 = arith.truncf %72 : vector<10x128xf32> to vector<10x128xbf16>
    %c10_43 = arith.constant 10 : index
    %c128_44 = arith.constant 128 : index
    %74 = vector.load %arg17[%c10_43, %c128_44] : memref<20x640xbf16, #tpu.memory_space<vmem>>, vector<10x128xbf16>
    tpu.vector_store %arg17[%c10_43, %c128_44], %73 {strides = array<i32>} : memref<20x640xbf16, #tpu.memory_space<vmem>>, vector<10x128xbf16>,
    %75 = vector.extract_strided_slice %53 {offsets = [16, 0], sizes = [10, 128], strides = [1, 1]} : vector<28x128xf32> to vector<10x128xf32>
    %76 = arith.truncf %75 : vector<10x128xf32> to vector<10x128xbf16>
    %c10_45 = arith.constant 10 : index
    %c256_46 = arith.constant 256 : index
    %77 = vector.load %arg17[%c10_45, %c256_46] : memref<20x640xbf16, #tpu.memory_space<vmem>>, vector<10x128xbf16>
    tpu.vector_store %arg17[%c10_45, %c256_46], %76 {strides = array<i32>} : memref<20x640xbf16, #tpu.memory_space<vmem>>, vector<10x128xbf16>,
    %78 = vector.extract_strided_slice %53 {offsets = [17, 0], sizes = [10, 128], strides = [1, 1]} : vector<28x128xf32> to vector<10x128xf32>
    %79 = arith.truncf %78 : vector<10x128xf32> to vector<10x128xbf16>
    %c10_47 = arith.constant 10 : index
    %c384_48 = arith.constant 384 : index
    %80 = vector.load %arg17[%c10_47, %c384_48] : memref<20x640xbf16, #tpu.memory_space<vmem>>, vector<10x128xbf16>
    tpu.vector_store %arg17[%c10_47, %c384_48], %79 {strides = array<i32>} : memref<20x640xbf16, #tpu.memory_space<vmem>>, vector<10x128xbf16>,
    %81 = vector.extract_strided_slice %53 {offsets = [18, 0], sizes = [10, 128], strides = [1, 1]} : vector<28x128xf32> to vector<10x128xf32>
    %82 = arith.truncf %81 : vector<10x128xf32> to vector<10x128xbf16>
    %c10_49 = arith.constant 10 : index
    %c512_50 = arith.constant 512 : index
    %83 = vector.load %arg17[%c10_49, %c512_50] : memref<20x640xbf16, #tpu.memory_space<vmem>>, vector<10x128xbf16>
    tpu.vector_store %arg17[%c10_49, %c512_50], %82 {strides = array<i32>} : memref<20x640xbf16, #tpu.memory_space<vmem>>, vector<10x128xbf16>,
    %c0_51 = arith.constant 0 : index
    %c0_52 = arith.constant 0 : index
    %84 = vector.load %arg17[%c0_51, %c0_52] : memref<20x640xbf16, #tpu.memory_space<vmem>>, vector<20x640xbf16>
    %c0_53 = arith.constant 0 : index
    %c0_54 = arith.constant 0 : index
    %85 = vector.load %arg5[%c0_53, %c0_54] : memref<640x160xbf16, #tpu.memory_space<vmem>>, vector<640x160xbf16>
    %cst_55 = arith.constant dense<0.000000e+00> : vector<20x160xf32>
    %86 = tpu.matmul %84, %85, %cst_55 {dimension_numbers = #tpu.dot_dimension_numbers<[1], [0], [0], [1], [0, 0, 1, 1], [], []>} : vector<20x640xbf16>, vector<640x160xbf16>, vector<20x160xf32> -> vector<20x160xf32>
    %c0_56 = arith.constant 0 : index
    %c0_57 = arith.constant 0 : index
    %87 = vector.load %arg6[%c0_56, %c0_57] : memref<1x160xf32, #tpu.memory_space<vmem>>, vector<1x160xf32>
    %88 = vector.broadcast %87 : vector<1x160xf32> to vector<20x160xf32>
    %89 = arith.addf %86, %88 : vector<20x160xf32>
    %cst_58 = arith.constant 0.000000e+00 : f32
    %90 = vector.broadcast %cst_58 : f32 to vector<20x160xf32>
    %91 = arith.maximumf %89, %90 : vector<20x160xf32>
    %c0_59 = arith.constant 0 : index
    %c0_60 = arith.constant 0 : index
    %92 = vector.load %arg7[%c0_59, %c0_60] : memref<20x20xbf16, #tpu.memory_space<vmem>>, vector<20x20xbf16>
    %93 = arith.truncf %91 : vector<20x160xf32> to vector<20x160xbf16>
    %cst_61 = arith.constant dense<0.000000e+00> : vector<20x160xf32>
    %94 = tpu.matmul %92, %93, %cst_61 {dimension_numbers = #tpu.dot_dimension_numbers<[1], [0], [0], [1], [0, 0, 1, 1], [], []>} : vector<20x20xbf16>, vector<20x160xbf16>, vector<20x160xf32> -> vector<20x160xf32>
    %95 = vector.extract_strided_slice %94 {offsets = [0, 0], sizes = [10, 160], strides = [1, 1]} : vector<20x160xf32> to vector<10x160xf32>
    %96 = vector.extract_strided_slice %94 {offsets = [10, 0], sizes = [10, 160], strides = [1, 1]} : vector<20x160xf32> to vector<10x160xf32>
    %97 = arith.maximumf %95, %96 : vector<10x160xf32>
    %c0_62 = arith.constant 0 : index
    %c0_63 = arith.constant 0 : index
    %98 = vector.load %arg8[%c0_62, %c0_63] : memref<160x256xbf16, #tpu.memory_space<vmem>>, vector<160x256xbf16>
    %99 = arith.truncf %97 : vector<10x160xf32> to vector<10x160xbf16>
    %cst_64 = arith.constant dense<0.000000e+00> : vector<10x256xf32>
    %100 = tpu.matmul %99, %98, %cst_64 {dimension_numbers = #tpu.dot_dimension_numbers<[1], [0], [0], [1], [0, 0, 1, 1], [], []>} : vector<10x160xbf16>, vector<160x256xbf16>, vector<10x256xf32> -> vector<10x256xf32>
    %101 = vector.extract_strided_slice %100 {offsets = [0, 0], sizes = [10, 128], strides = [1, 1]} : vector<10x256xf32> to vector<10x128xf32>
    %102 = vector.extract_strided_slice %100 {offsets = [0, 128], sizes = [10, 128], strides = [1, 1]} : vector<10x256xf32> to vector<10x128xf32>
    %103 = arith.maximumf %101, %102 : vector<10x128xf32>
    %104 = vector.extract_strided_slice %103 {offsets = [0, 0], sizes = [2, 128], strides = [1, 1]} : vector<10x128xf32> to vector<2x128xf32>
    %c0_65 = arith.constant 0 : index
    %c0_66 = arith.constant 0 : index
    %c0_67 = arith.constant 0 : index
    %105 = vector.load %arg9[%c0_65, %c0_66, %c0_67] : memref<5x128x120xbf16, #tpu.memory_space<vmem>>, vector<1x128x120xbf16>
    %106 = vector.shape_cast %105 : vector<1x128x120xbf16> to vector<128x120xbf16>
    %107 = arith.truncf %104 : vector<2x128xf32> to vector<2x128xbf16>
    %cst_68 = arith.constant dense<0.000000e+00> : vector<2x120xf32>
    %108 = tpu.matmul %107, %106, %cst_68 {dimension_numbers = #tpu.dot_dimension_numbers<[1], [0], [0], [1], [0, 0, 1, 1], [], []>} : vector<2x128xbf16>, vector<128x120xbf16>, vector<2x120xf32> -> vector<2x120xf32>
    %109 = vector.extract_strided_slice %103 {offsets = [2, 0], sizes = [2, 128], strides = [1, 1]} : vector<10x128xf32> to vector<2x128xf32>
    %c1_69 = arith.constant 1 : index
    %c0_70 = arith.constant 0 : index
    %c0_71 = arith.constant 0 : index
    %110 = vector.load %arg9[%c1_69, %c0_70, %c0_71] : memref<5x128x120xbf16, #tpu.memory_space<vmem>>, vector<1x128x120xbf16>
    %111 = vector.shape_cast %110 : vector<1x128x120xbf16> to vector<128x120xbf16>
    %112 = arith.truncf %109 : vector<2x128xf32> to vector<2x128xbf16>
    %cst_72 = arith.constant dense<0.000000e+00> : vector<2x120xf32>
    %113 = tpu.matmul %112, %111, %cst_72 {dimension_numbers = #tpu.dot_dimension_numbers<[1], [0], [0], [1], [0, 0, 1, 1], [], []>} : vector<2x128xbf16>, vector<128x120xbf16>, vector<2x120xf32> -> vector<2x120xf32>
    %114 = arith.addf %108, %113 : vector<2x120xf32>
    %115 = vector.extract_strided_slice %103 {offsets = [4, 0], sizes = [2, 128], strides = [1, 1]} : vector<10x128xf32> to vector<2x128xf32>
    %c2 = arith.constant 2 : index
    %c0_73 = arith.constant 0 : index
    %c0_74 = arith.constant 0 : index
    %116 = vector.load %arg9[%c2, %c0_73, %c0_74] : memref<5x128x120xbf16, #tpu.memory_space<vmem>>, vector<1x128x120xbf16>
    %117 = vector.shape_cast %116 : vector<1x128x120xbf16> to vector<128x120xbf16>
    %118 = arith.truncf %115 : vector<2x128xf32> to vector<2x128xbf16>
    %cst_75 = arith.constant dense<0.000000e+00> : vector<2x120xf32>
    %119 = tpu.matmul %118, %117, %cst_75 {dimension_numbers = #tpu.dot_dimension_numbers<[1], [0], [0], [1], [0, 0, 1, 1], [], []>} : vector<2x128xbf16>, vector<128x120xbf16>, vector<2x120xf32> -> vector<2x120xf32>
    %120 = arith.addf %114, %119 : vector<2x120xf32>
    %121 = vector.extract_strided_slice %103 {offsets = [6, 0], sizes = [2, 128], strides = [1, 1]} : vector<10x128xf32> to vector<2x128xf32>
    %c3 = arith.constant 3 : index
    %c0_76 = arith.constant 0 : index
    %c0_77 = arith.constant 0 : index
    %122 = vector.load %arg9[%c3, %c0_76, %c0_77] : memref<5x128x120xbf16, #tpu.memory_space<vmem>>, vector<1x128x120xbf16>
    %123 = vector.shape_cast %122 : vector<1x128x120xbf16> to vector<128x120xbf16>
    %124 = arith.truncf %121 : vector<2x128xf32> to vector<2x128xbf16>
    %cst_78 = arith.constant dense<0.000000e+00> : vector<2x120xf32>
    %125 = tpu.matmul %124, %123, %cst_78 {dimension_numbers = #tpu.dot_dimension_numbers<[1], [0], [0], [1], [0, 0, 1, 1], [], []>} : vector<2x128xbf16>, vector<128x120xbf16>, vector<2x120xf32> -> vector<2x120xf32>
    %126 = arith.addf %120, %125 : vector<2x120xf32>
    %127 = vector.extract_strided_slice %103 {offsets = [8, 0], sizes = [2, 128], strides = [1, 1]} : vector<10x128xf32> to vector<2x128xf32>
    %c4 = arith.constant 4 : index
    %c0_79 = arith.constant 0 : index
    %c0_80 = arith.constant 0 : index
    %128 = vector.load %arg9[%c4, %c0_79, %c0_80] : memref<5x128x120xbf16, #tpu.memory_space<vmem>>, vector<1x128x120xbf16>
    %129 = vector.shape_cast %128 : vector<1x128x120xbf16> to vector<128x120xbf16>
    %130 = arith.truncf %127 : vector<2x128xf32> to vector<2x128xbf16>
    %cst_81 = arith.constant dense<0.000000e+00> : vector<2x120xf32>
    %131 = tpu.matmul %130, %129, %cst_81 {dimension_numbers = #tpu.dot_dimension_numbers<[1], [0], [0], [1], [0, 0, 1, 1], [], []>} : vector<2x128xbf16>, vector<128x120xbf16>, vector<2x120xf32> -> vector<2x120xf32>
    %132 = arith.addf %126, %131 : vector<2x120xf32>
    %c0_82 = arith.constant 0 : index
    %c0_83 = arith.constant 0 : index
    %133 = vector.load %arg10[%c0_82, %c0_83] : memref<1x120xf32, #tpu.memory_space<vmem>>, vector<1x120xf32>
    %134 = vector.broadcast %133 : vector<1x120xf32> to vector<2x120xf32>
    %135 = arith.addf %132, %134 : vector<2x120xf32>
    %cst_84 = arith.constant 0.000000e+00 : f32
    %136 = vector.broadcast %cst_84 : f32 to vector<2x120xf32>
    %137 = arith.maximumf %135, %136 : vector<2x120xf32>
    %c0_85 = arith.constant 0 : index
    %c0_86 = arith.constant 0 : index
    %138 = vector.load %arg11[%c0_85, %c0_86] : memref<120x84xbf16, #tpu.memory_space<vmem>>, vector<120x84xbf16>
    %139 = arith.truncf %137 : vector<2x120xf32> to vector<2x120xbf16>
    %cst_87 = arith.constant dense<0.000000e+00> : vector<2x84xf32>
    %140 = tpu.matmul %139, %138, %cst_87 {dimension_numbers = #tpu.dot_dimension_numbers<[1], [0], [0], [1], [0, 0, 1, 1], [], []>} : vector<2x120xbf16>, vector<120x84xbf16>, vector<2x84xf32> -> vector<2x84xf32>
    %c0_88 = arith.constant 0 : index
    %c0_89 = arith.constant 0 : index
    %141 = vector.load %arg12[%c0_88, %c0_89] : memref<1x84xf32, #tpu.memory_space<vmem>>, vector<1x84xf32>
    %142 = vector.broadcast %141 : vector<1x84xf32> to vector<2x84xf32>
    %143 = arith.addf %140, %142 : vector<2x84xf32>
    %cst_90 = arith.constant 0.000000e+00 : f32
    %144 = vector.broadcast %cst_90 : f32 to vector<2x84xf32>
    %145 = arith.maximumf %143, %144 : vector<2x84xf32>
    %c0_91 = arith.constant 0 : index
    %c0_92 = arith.constant 0 : index
    %146 = vector.load %arg13[%c0_91, %c0_92] : memref<84x10xbf16, #tpu.memory_space<vmem>>, vector<84x10xbf16>
    %147 = arith.truncf %145 : vector<2x84xf32> to vector<2x84xbf16>
    %cst_93 = arith.constant dense<0.000000e+00> : vector<2x10xf32>
    %148 = tpu.matmul %147, %146, %cst_93 {dimension_numbers = #tpu.dot_dimension_numbers<[1], [0], [0], [1], [0, 0, 1, 1], [], []>} : vector<2x84xbf16>, vector<84x10xbf16>, vector<2x10xf32> -> vector<2x10xf32>
    %c0_94 = arith.constant 0 : index
    %c0_95 = arith.constant 0 : index
    %149 = vector.load %arg14[%c0_94, %c0_95] : memref<1x10xf32, #tpu.memory_space<vmem>>, vector<1x10xf32>
    %150 = vector.broadcast %149 : vector<1x10xf32> to vector<2x10xf32>
    %151 = arith.addf %148, %150 : vector<2x10xf32>
    %c0_96 = arith.constant 0 : index
    %c0_97 = arith.constant 0 : index
    %152 = vector.load %arg15[%c0_96, %c0_97] : memref<2x10xf32, #tpu.memory_space<vmem>>, vector<2x10xf32>
    tpu.vector_store %arg15[%c0_96, %c0_97], %151 {strides = array<i32>} : memref<2x10xf32, #tpu.memory_space<vmem>>, vector<2x10xf32>,
    return
  }
}

</mosaic_0001>

<bundles_post_ra>
// kernel: lenet_forward.1
= control target key start
LH: loop header
LB: loop body
LE: loop exit
PB: predicated region body
PF: predicated region fallthrough
CT: control target
= control target key end

     0   :  { %vm126_vm0 = vcmask 1042432   ;;  %vm127_vm1 = vcmask 1046532   ;;  %vm76_vm2 = vsmask.f32 3328  ;;  %vm77_vm3 = vsmask.f32 7440  ;;  %s5786_s0 = inlined_call_operand.vmem [shape: f32[2,32,128], index: 0, kind: input, shape index: {}]   ;;  %s5787_s1 = inlined_call_operand.vmem [shape: bf16[640,168], index: 1, kind: input, shape index: {}]   ;;  %s5788_s2 = inlined_call_operand.vmem [shape: f32[1,168], index: 2, kind: input, shape index: {}]   ;;  %s5789_s3 = inlined_call_operand.vmem [shape: bf16[56,56], index: 3, kind: input, shape index: {}]   ;;  %s5790_s4 = inlined_call_operand.vmem [shape: bf16[168,256], index: 4, kind: input, shape index: {}]   ;;  %s5791_s5 = inlined_call_operand.vmem [shape: bf16[640,160], index: 5, kind: input, shape index: {}]   ;;  %s5792_s6 = inlined_call_operand.vmem [shape: f32[1,160], index: 6, kind: input, shape index: {}]   ;;  %s5793_s7 = inlined_call_operand.vmem [shape: bf16[20,20], index: 7, kind: input, shape index: {}]   ;;  %s5794_s8 = inlined_call_operand.vmem [shape: bf16[160,256], index: 8, kind: input, shape index: {}]   ;;  %s5795_s9 = inlined_call_operand.vmem [shape: bf16[5,128,120], index: 9, kind: input, shape index: {}]   ;;  %s5796_s10 = inlined_call_operand.vmem [shape: f32[1,120], index: 10, kind: input, shape index: {}]   ;;  %s5797_s11 = inlined_call_operand.vmem [shape: bf16[120,84], index: 11, kind: input, shape index: {}]   ;;  %s5798_s12 = inlined_call_operand.vmem [shape: f32[1,84], index: 12, kind: input, shape index: {}]   ;;  %s5799_s13 = inlined_call_operand.vmem [shape: bf16[84,10], index: 13, kind: input, shape index: {}]   ;;  %s5800_s14 = inlined_call_operand.vmem [shape: f32[1,10], index: 14, kind: input, shape index: {}]   ;;  %s5801_s15 = inlined_call_operand.hbm [shape: f32[2,10], index: 15, kind: output, shape index: {}]  }
   0x1   :  { %v4113_v0 = vld [vmem:[%s5787_s1 + $0x4] ss:$8 sps:$4 sm:$0xff]   ;;  %v4115_v1 = vld [vmem:[%s5787_s1] ss:$8 sps:$4 sm:$0xff]   ;;  %v4116_v2 = vld [vmem:[%s5787_s1 + $0x14] ss:$8 sps:$4 sm:$0xff]  }
   0x2   :  { %947 = vmatprep.subr.bf16.mxu0 %v4113_v0  ;;  %v4118_v3 = vld [vmem:[%s5787_s1 + $0x10] ss:$8 sps:$4 sm:$0xff]   ;;  %v4119_v4 = vld [vmem:[%s5787_s1 + $0x24] ss:$8 sps:$4 sm:$0xff]   ;;  %v4121_v5 = vld [vmem:[%s5787_s1 + $0x20] ss:$8 sps:$4 sm:$0xff]  }
   0x3   :  { %948 = vmatpush1.bf16.msra.mxu0 %v4115_v1  ;;  %v4122_v6 = vld [vmem:[%s5787_s1 + $0x34] ss:$8 sps:$4 sm:$0xff]   ;;  %v4124_v7 = vld [vmem:[%s5787_s1 + $0x30] ss:$8 sps:$4 sm:$0xff]   ;;  %v4125_v8 = vld [vmem:[%s5787_s1 + $0x44] ss:$8 sps:$4 sm:$0xff]  }
   0x4   :  { %949 = vmatprep.subr.bf16.mxu0 %v4116_v2  ;;  %v4127_v9 = vld [vmem:[%s5787_s1 + $0x40] ss:$8 sps:$4 sm:$0xff]   ;;  %v4128_v10 = vld [vmem:[%s5787_s1 + $0x54] ss:$8 sps:$4 sm:$0xff]   ;;  %v4130_v11 = vld [vmem:[%s5787_s1 + $0x50] ss:$8 sps:$4 sm:$0xff]  }
   0x5   :  { %v4131_v12 = vld [vmem:[%s5787_s1 + $0x64] ss:$8 sps:$4 sm:$0xff]   ;;  %v54_v15 = vld [vmem:[%s5786_s0 + $0x10] sm:$0xff]  ;;  %v4133_v18 = vld [vmem:[%s5787_s1 + $0x60] ss:$8 sps:$4 sm:$0xff]   ;;  %vm178_vm8 = vcmask 1041408  }
   0x6   :  { %v52_v13 = vld [vmem:[%s5786_s0] sm:$0xff]  ;;  %v53_v14 = vld [vmem:[%s5786_s0 + $0x8] sm:$0xff]  ;;  %v4134_v19 = vld [vmem:[%s5787_s1 + $0x74] ss:$8 sps:$4 sm:$0xff]   ;;  %v4678_v20 = vpack.c.bf16 %v54_v15, %v54_v15  ;;  %vm148_vm6 = vsmask.f32 2304 }
   0x7   :  { %950 = vmatpush1.bf16.msra.mxu0 %v4118_v3  ;;  %v4668_v16 = vpack.c.bf16 %v52_v13, %v52_v13  ;;  %v4670_v17 = vpack.c.bf16 %v53_v14, %v53_v14  ;;  %v4136_v30 = vld [vmem:[%s5787_s1 + $0x70] ss:$8 sps:$4 sm:$0xff]   ;;  %vm4694_vm4 = vmor %vm126_vm0, %vm127_vm1  ;;  %v4137_v34 = vld [vmem:[%s5787_s1 + $0x84] ss:$8 sps:$4 sm:$0xff]   ;;  %vm149_vm7 = vsmask.f32 6416 }
   0x8   :  { %951 = vmatprep.subr.bf16.mxu0 %v4119_v4  ;;  %v99_v25 = vshll.u32 %v4678_v20, 16  ;;  %74 = vst [vmem:[#allocation2 + $0x28] sm:$0xf] %v4678_v20  ;;  %v103_v32 = vshrl.u32 %v4678_v20, 16  ;;  %vm4705_vm5 = vmor %vm76_vm2, %vm77_vm3  ;;  %v134_v43 = vrot.slane %v4678_v20, 5  ;;  %vm179_vm9 = vcmask 1045508  }
   0x9   :  { %72 = vst [vmem:[#allocation2] sm:$0xf] %v4668_v16  ;;  %73 = vst [vmem:[#allocation2 + $0x14] sm:$0xf] %v4670_v17  ;;  %v80_v21 = vshrl.u32 %v4668_v16, 16  ;;  %v83_v22 = vshll.u32 %v4668_v16, 16 }
   0xa   :  { %v89_v23 = vshll.u32 %v4670_v17, 16  ;;  %v93_v24 = vshrl.u32 %v4670_v17, 16  ;;  %v101_v31 = vrot.slane %v99_v25, 5  ;;  %v3435_v37 = vrot.slane %v4668_v16, 9  ;;  %v4139_v44 = vld [vmem:[%s5787_s1 + $0x80] ss:$8 sps:$4 sm:$0xff]   ;;  %vm4733_vm10 = vmor %vm148_vm6, %vm149_vm7 }
   0xb   :  { %952 = vmatpush1.bf16.msra.mxu0 %v4121_v5  ;;  %v82_v26 = vrot.slane %v80_v21, 4  ;;  %v85_v27 = vrot.slane %v83_v22, 5  ;;  %v131_v38 = vrot.slane %v4670_v17, 5  ;;  %v105_v45 = vrot.slane %v103_v32, 4  ;;  %v4140_v47 = vld [vmem:[%s5787_s1 + $0x94] ss:$8 sps:$4 sm:$0xff]   ;;  %vm4757_vm11 = vmor %vm178_vm8, %vm179_vm9 }
   0xc   :  { %953 = vmatprep.subr.bf16.mxu0 %v4122_v6  ;;  %v91_v28 = vrot.slane %v89_v23, 5  ;;  %v95_v29 = vrot.slane %v93_v24, 4  ;;  %v156_v46 = vrot.slane %v89_v23, 6  ;;  %v151_v51 = vrot.slane %v80_v21, 5  ;;  %v4142_v54 = vld [vmem:[%s5787_s1 + $0x90] ss:$8 sps:$4 sm:$0xff]  }
   0xd   :  { %v86_v35 = vor.u32 %v85_v27, %v82_v26  ;;  %v132_v42 = vsel %vm4694_vm4, %v3435_v37, %v131_v38  ;;  %v133_v50 = vrot.slane %v131_v38, 4  ;;  %v161_v52 = vrot.slane %v99_v25, 6  ;;  %v4143_v57 = vld [vmem:[%s5787_s1 + $0xa4] ss:$8 sps:$4 sm:$0xff]   ;;  %v55_v0 = vld [vmem:[%s5786_s0 + $0x18] sm:$0xff] }
   0xe   :  { %v96_v36 = vor.u32 %v95_v29, %v91_v28  ;;  %144 = vst [vmem:[#allocation2 + $0x8] sm:$0xf] %v132_v42  ;;  %v152_v53 = vrot.slane %v83_v22, 6  ;;  %v155_v56 = vrot.slane %v93_v24, 5  ;;  %v106_v58 = vor.u32 %v105_v45, %v101_v31  ;;  %v3437_v5 = vld [vmem:[%s5786_s0 + $0x20] sm:$0xff] }
   0xf   :  { %954 = vmatpush1.bf16.msra.mxu0 %v4124_v7  ;;  %v87_v40 = vrot.slane %v86_v35, 4  ;;  %v135_v55 = vsel %vm4694_vm4, %v133_v50, %v134_v43  ;;  %v160_v60 = vrot.slane %v103_v32, 5  ;;  %v3436_v63 = vrot.slane %v4668_v16, 10  ;;  %v4146_v13 = vld [vmem:[%s5787_s1 + $0xb4] ss:$8 sps:$4 sm:$0xff]  }
  0x10   :  { %955 = vmatprep.subr.bf16.mxu0 %v4125_v8  ;;  %v97_v41 = vrot.slane %v96_v36, 4  ;;  %145 = vst [vmem:[#allocation2 + $0x1c] sm:$0xf] %v135_v55  ;;  %v153_v59 = vor.u32 %v152_v53, %v151_v51  ;;  %v157_v62 = vor.u32 %v156_v46, %v155_v56  ;;  %v4536_v3 = vmov 0   ;;  %v4145_v8 = vld [vmem:[%s5787_s1 + $0xa0] ss:$8 sps:$4 sm:$0xff]  }
  0x11   :  { %v92_v48 = vsel %vm4705_vm5, %v87_v40, %v91_v28  ;;  %v4741_v2 = vor.u32 %v161_v52, %v160_v60  ;;  %1259 = vmatprep.mubr.bf16.mxu1 %v4536_v3  ;;  %v4744_v4 = vpack.c.bf16 %v55_v0, %v55_v0  ;;  %v183_v7 = vrot.slane %v4670_v17, 6  ;;  %v4148_v24 = vld [vmem:[%s5787_s1 + $0xb0] ss:$8 sps:$4 sm:$0xff]   ;;  %v4149_v32 = vld [vmem:[%s5787_s1 + $0xc4] ss:$8 sps:$4 sm:$0xff]  }
  0x12   :  { %v102_v49 = vsel %vm4705_vm5, %v97_v41, %v101_v31  ;;  %122 = vst [vmem:[#allocation2 + $0x4] sm:$0xf] %v92_v48  ;;  %v154_v1 = vrot.slane %v153_v59, 4  ;;  %v159_v6 = vrot.slane %v157_v62, 4  ;;  %vm235_vm12 = vsmask.f32 1280 }
  0x13   :  { %956 = vmatpush1.bf16.msra.mxu0 %v4127_v9  ;;  %123 = vst [vmem:[#allocation2 + $0x18] sm:$0xf] %v102_v49  ;;  %v107_v9 = vrot.slane %v106_v58, 4  ;;  %75 = vst [vmem:[#allocation2 + $0x3c] sm:$0x3] %v4744_v4  ;;  %v109_v14 = vshll.u32 %v4744_v4, 16 }
  0x14   :  { %957 = vmatprep.subr.bf16.mxu0 %v4128_v10  ;;  %v4753_v10 = vpack.c.bf16 %v3437_v5, %v3437_v5  ;;  %v113_v15 = vshrl.u32 %v4744_v4, 16  ;;  %v163_v16 = vsel %vm4733_vm10, %v159_v6, %v4741_v2  ;;  %v3439_v31 = vld [vmem:[%s5786_s0 + $0x30] sm:$0xff]  ;;  %vm236_vm13 = vsmask.f32 5392  ;;  %v4151_v42 = vld [vmem:[%s5787_s1 + $0xc0] ss:$8 sps:$4 sm:$0xff]  }
  0x15   :  { %175 = vst [vmem:[#allocation2 + $0x20] sm:$0xf] %v163_v16  ;;  %v111_v25 = vrot.slane %v109_v14, 5  ;;  %v4804_v37 = vpack.c.bf16 %v3439_v31, %v3439_v31  ;;  %v136_v40 = vrot.slane %v134_v43, 4  ;;  %v137_v41 = vrot.slane %v4744_v4, 5  ;;  %v3440_v51 = vld [vmem:[%s5786_s0 + $0x38] sm:$0xff]  ;;  %vm4845_vm14 = vmor %vm235_vm12, %vm236_vm13 }
  0x16   :  { %v217_v21 = vrot.slane %v4753_v10, 6  ;;  %v239_v22 = vshrl.u32 %v4753_v10, 16  ;;  %v242_v23 = vshll.u32 %v4753_v10, 16  ;;  %334 = vst [vmem:[#allocation2 + $0x4c] sm:$0xc] %v4753_v10  ;;  %v115_v26 = vrot.slane %v113_v15, 4 }
  0x17   :  { %958 = vmatpush1.bf16.msra.mxu0 %v4130_v11  ;;  %v222_v46 = vrot.slane %v4804_v37, 6  ;;  %336 = vst [vmem:[#allocation2 + $0x74] sm:$0xf] %v4804_v37  ;;  %v258_v49 = vshrl.u32 %v4804_v37, 16  ;;  %v261_v50 = vshll.u32 %v4804_v37, 16  ;;  %v4830_v56 = vpack.c.bf16 %v3440_v51, %v3440_v51 }
  0x18   :  { %959 = vmatprep.subr.bf16.mxu0 %v4131_v12  ;;  %v158_v12 = vsel %vm4733_vm10, %v154_v1, %v157_v62  ;;  %v218_v27 = vrot.slane %v217_v21, 4  ;;  %231 = vst [vmem:[#allocation2 + $0x3c] sm:$0xc] %v217_v21  ;;  %v241_v28 = vrot.slane %v239_v22, 6  ;;  %v244_v29 = vrot.slane %v242_v23, 7 }
  0x19   :  { %174 = vst [vmem:[#allocation2 + $0xc] sm:$0xf] %v158_v12  ;;  %v116_v35 = vor.u32 %v115_v26, %v111_v25  ;;  %v4152_v52 = vld [vmem:[%s5787_s1 + $0xd4] ss:$8 sps:$4 sm:$0xff]   ;;  %v260_v58 = vrot.slane %v258_v49, 6  ;;  %v263_v59 = vrot.slane %v261_v50, 7 }
  0x1a   :  { %v245_v38 = vor.u32 %v244_v29, %v241_v28  ;;  %v224_v60 = vrot.slane %v222_v46, 4  ;;  %v4154_v62 = vld [vmem:[%s5787_s1 + $0xd0] ss:$8 sps:$4 sm:$0xff]   ;;  %v225_v1 = vrot.slane %v4830_v56, 6  ;;  %v268_v5 = vshrl.u32 %v4830_v56, 16 }
  0x1b   :  { %960 = vmatpush1.bf16.msra.mxu0 %v4133_v18  ;;  %v184_v18 = vsel %vm4757_vm11, %v3436_v63, %v183_v7  ;;  %v271_v6 = vshll.u32 %v4830_v56, 16  ;;  %337 = vst [vmem:[#allocation2 + $0x88] sm:$0xf] %v4830_v56  ;;  %v264_v12 = vor.u32 %v263_v59, %v260_v58  ;;  %v139_v16 = vrot.slane %v137_v41, 4  ;;  %v4157_v31 = vld [vmem:[%s5787_s1 + $0xe0] ss:$8 sps:$4 sm:$0xff]  }
  0x1c   :  { %961 = vmatprep.subr.bf16.mxu0 %v4134_v19  ;;  %v4163_v19 = vld [vmem:[#allocation2 + $0x4] ss:$20 sps:$4 sm:$0xff]   ;;  %196 = vst [vmem:[#allocation2 + $0x10] sm:$0xf] %v184_v18  ;;  %v246_v48 = vrot.slane %v245_v38, 4  ;;  %v226_v18 = vsel %vm4757_vm11, %v224_v60, %v225_v1  ;;  %v164_v29 = vrot.slane %v4741_v2, 4 }
  0x1d   :  { %979 = vmatprep.mubr.bf16.mxu0 %v4163_v19  ;;  %280 = vst [vmem:[#allocation2 + $0x40] sm:$0xc] %v245_v38  ;;  %v270_v19 = vrot.slane %v268_v5, 6  ;;  %v273_v21 = vrot.slane %v271_v6, 7  ;;  %234 = vst [vmem:[#allocation2 + $0x78] sm:$0xf] %v226_v18 }
  0x1e   :  { %147 = vst [vmem:[#allocation2 + $0x44] sm:$0x3] %v139_v16  ;;  %vm284_vm15 = vcmask 1040384   ;;  %vm285_vm0 = vcmask 1044484   ;;  %v4158_v2 = vld [vmem:[%s5787_s1 + $0xf4] ss:$8 sps:$4 sm:$0xff]  }
  0x1f   :  { %962 = vmatpush1.bf16.msra.mxu0 %v4136_v30  ;;  %v3438_v30 = vld [vmem:[%s5786_s0 + $0x28] sm:$0xff]  ;;  %v274_v28 = vor.u32 %v273_v21, %v270_v19  ;;  %vm305_vm1 = vsmask.f32 256  ;;  %v4160_v38 = vld [vmem:[%s5787_s1 + $0xf0] ss:$8 sps:$4 sm:$0xff]   ;;  %vm4891_vm3 = vmor %vm284_vm15, %vm285_vm0  ;;  %v292_v51 = vrot.slane %v4804_v37, 7 }
  0x20   :  { %963 = vmatprep.subr.bf16.mxu0 %v4137_v34  ;;  %v112_v34 = vsel %vm4705_vm5, %v107_v9, %v111_v25  ;;  %v4802_v36 = vpack.c.bf16 %v3438_v30, %v3438_v30  ;;  %v166_v30 = vrot.slane %v109_v14, 6  ;;  %vm306_vm2 = vsmask.f32 4368  ;;  %v4161_v59 = vld [vmem:[#allocation2] ss:$20 sps:$4 sm:$0xff]  }
  0x21   :  { %124 = vst [vmem:[#allocation2 + $0x2c] sm:$0xf] %v112_v34  ;;  %vm4906_vm6 = vmor %vm305_vm1, %vm306_vm2  ;;  %v4164_v60 = vld [vmem:[%s5787_s1 + $0x100] ss:$8 sps:$4 sm:$0xff]   ;;  %v4169_v37 = vld [vmem:[%s5787_s1 + $0x114] ss:$8 sps:$4 sm:$0xff]  }
  0x22   :  { %v219_v45 = vrot.slane %v4802_v36, 6  ;;  %335 = vst [vmem:[#allocation2 + $0x60] sm:$0xf] %v4802_v36  ;;  %v251_v43 = vshll.u32 %v4802_v36, 16  ;;  %v4170_v19 = vld [vmem:[%s5787_s1 + $0x120] ss:$8 sps:$4 sm:$0xff]  }
  0x23   :  { %964 = vmatpush1.bf16.msra.mxu0 %v4139_v44  ;;  %v117_v44 = vrot.slane %v116_v35, 4  ;;  %v308_v35 = vrot.slane %v239_v22, 7 }
  0x24   :  { %965 = vmatprep.subr.bf16.mxu0 %v4140_v47  ;;  %v248_v47 = vshrl.u32 %v4802_v36, 16  ;;  %v220_v53 = vsel %vm4757_vm11, %v218_v27, %v219_v45  ;;  %v266_v27 = vrot.slane %v264_v12, 4 }
  0x25   :  { %125 = vst [vmem:[#allocation2 + $0x40] sm:$0x3] %v117_v44  ;;  %232 = vst [vmem:[#allocation2 + $0x50] sm:$0xf] %v220_v53  ;;  %v309_v44 = vor.u32 %v308_v35, %v242_v23  ;;  %v315_v23 = vrot.slane %v258_v49, 7  ;;  %v295_v53 = vrot.slane %v4830_v56, 7 }
  0x26   :  { %v250_v55 = vrot.slane %v248_v47, 6  ;;  %v275_v14 = vsel %vm4845_vm14, %v266_v27, %v274_v28  ;;  %v4178_v28 = vld [vmem:[%s5787_s1 + $0x144] ss:$8 sps:$4 sm:$0xff]  }
  0x27   :  { %966 = vmatpush1.bf16.msra.mxu0 %v4142_v54  ;;  %v221_v54 = vrot.slane %v219_v45, 4  ;;  %283 = vst [vmem:[#allocation2 + $0x7c] sm:$0xf] %v275_v14  ;;  %v310_v45 = vrot.slane %v308_v35, 4  ;;  %326 = vst [vmem:[#allocation2 + $0x48] sm:$0xc] %v309_v44 }
  0x28   :  { %967 = vmatprep.subr.bf16.mxu0 %v4143_v57  ;;  %v253_v57 = vrot.slane %v251_v43, 7  ;;  %v4184_v14 = vld [vmem:[%s5787_s1 + $0x164] ss:$8 sps:$4 sm:$0xff]   ;;  %v4188_v44 = vld [vmem:[%s5787_s1 + $0x180] ss:$8 sps:$4 sm:$0xff]  }
  0x29   :  { %v223_v63 = vsel %vm4757_vm11, %v221_v54, %v222_v46  ;;  %v4166_v46 = vld [vmem:[%s5787_s1 + $0x104] ss:$8 sps:$4 sm:$0xff]   ;;  %v319_v54 = vrot.slane %v268_v5, 7  ;;  %v318_v5 = vrot.slane %v315_v23, 4 }
  0x2a   :  { %233 = vst [vmem:[#allocation2 + $0x64] sm:$0xf] %v223_v63  ;;  %v254_v9 = vor.u32 %v253_v57, %v250_v55  ;;  %v186_v55 = vrot.slane %v4678_v20, 6  ;;  %v294_v63 = vrot.slane %v292_v51, 4  ;;  %v4221_v35 = vld [vmem:[#allocation2 + $0xc] ss:$20 sps:$4 sm:$0xff]  }
  0x2b   :  { %968 = vmatpush1.bf16.msra.mxu0 %v4145_v8  ;;  %v4155_v8 = vld [vmem:[%s5787_s1 + $0xe4] ss:$8 sps:$4 sm:$0xff]   ;;  %v320_v20 = vor.u32 %v319_v54, %v271_v6  ;;  %v4205_v54 = vld [vmem:[%s5787_s1 + $0x1c0] ss:$8 sps:$4 sm:$0xff]  }
  0x2c   :  { %969 = vmatprep.subr.bf16.mxu0 %v4146_v13  ;;  %v138_v13 = vsel %vm4694_vm4, %v136_v40, %v137_v41  ;;  %v255_v25 = vsel %vm4845_vm14, %v246_v48, %v254_v9  ;;  %v256_v26 = vrot.slane %v254_v9, 4  ;;  %v289_v48 = vrot.slane %v4802_v36, 7  ;;  %v4194_v1 = vld [vmem:[#allocation2 + $0x2c] ss:$20 sps:$4 sm:$0xff]  }
  0x2d   :  { %146 = vst [vmem:[#allocation2 + $0x30] sm:$0xf] %v138_v13  ;;  %281 = vst [vmem:[#allocation2 + $0x54] sm:$0xf] %v255_v25  ;;  %v296_v56 = vsel %vm4891_vm3, %v294_v63, %v295_v53  ;;  %v188_v6 = vrot.slane %v186_v55, 4  ;;  %v321_v17 = vsel %vm4906_vm6, %v318_v5, %v320_v20  ;;  %v189_v9 = vrot.slane %v4744_v4, 6 }
  0x2e   :  { %v291_v57 = vrot.slane %v289_v48, 4  ;;  %304 = vst [vmem:[#allocation2 + $0x80] sm:$0xf] %v296_v56  ;;  %329 = vst [vmem:[#allocation2 + $0x84] sm:$0xf] %v321_v17 }
  0x2f   :  { %970 = vmatpush1.bf16.msra.mxu0 %v4148_v24  ;;  %v165_v24 = vrot.slane %v113_v15, 5  ;;  %v265_v15 = vsel %vm4845_vm14, %v256_v26, %v264_v12  ;;  %v4167_v12 = vld [vmem:[%s5787_s1 + $0x110] ss:$8 sps:$4 sm:$0xff]   ;;  %v4172_v13 = vld [vmem:[%s5787_s1 + $0x124] ss:$8 sps:$4 sm:$0xff]   ;;  %v190_v16 = vsel %vm4757_vm11, %v188_v6, %v189_v9  ;;  %v191_v18 = vrot.slane %v189_v9, 4 }
  0x30   :  { %971 = vmatprep.subr.bf16.mxu0 %v4149_v32  ;;  %v287_v32 = vrot.slane %v4753_v10, 7  ;;  %282 = vst [vmem:[#allocation2 + $0x68] sm:$0xf] %v265_v15  ;;  %v311_v10 = vrot.slane %v248_v47, 7  ;;  %v293_v36 = vsel %vm4891_vm3, %v291_v57, %v292_v51  ;;  %198 = vst [vmem:[#allocation2 + $0x38] sm:$0xf] %v190_v16 }
  0x31   :  { %v167_v34 = vor.u32 %v166_v30, %v165_v24  ;;  %303 = vst [vmem:[#allocation2 + $0x6c] sm:$0xf] %v293_v36  ;;  %v4196_v4 = vld [vmem:[#allocation2 + $0x28] ss:$20 sps:$4 sm:$0xff]   ;;  %199 = vst [vmem:[#allocation2 + $0x4c] sm:$0x3] %v191_v18 }
  0x32   :  { %v288_v40 = vrot.slane %v287_v32, 4  ;;  %301 = vst [vmem:[#allocation2 + $0x44] sm:$0xc] %v287_v32  ;;  %v312_v49 = vor.u32 %v311_v10, %v251_v43  ;;  %v314_v58 = vrot.slane %v311_v10, 4  ;;  %v4175_v24 = vld [vmem:[%s5787_s1 + $0x134] ss:$8 sps:$4 sm:$0xff]  }
  0x33   :  { %972 = vmatpush1.bf16.msra.mxu0 %v4151_v42  ;;  %v168_v41 = vsel %vm4733_vm10, %v164_v29, %v167_v34  ;;  %v169_v42 = vrot.slane %v167_v34, 4  ;;  %v4173_v25 = vld [vmem:[%s5787_s1 + $0x130] ss:$8 sps:$4 sm:$0xff]   ;;  %v4176_v30 = vld [vmem:[%s5787_s1 + $0x140] ss:$8 sps:$4 sm:$0xff]  }
  0x34   :  { %973 = vmatprep.subr.bf16.mxu0 %v4152_v52  ;;  %176 = vst [vmem:[#allocation2 + $0x34] sm:$0xf] %v168_v41  ;;  %v290_v47 = vsel %vm4891_vm3, %v288_v40, %v289_v48  ;;  %v313_v43 = vsel %vm4906_vm6, %v310_v45, %v312_v49  ;;  %v350_v26 = vld [vmem:[#allocation2 + $0x50] sm:$0xff]  ;;  %v356_v29 = vld [vmem:[#allocation2 + $0x78] sm:$0xff]  ;;  %v4182_v34 = vld [vmem:[%s5787_s1 + $0x160] ss:$8 sps:$4 sm:$0xff]  }
  0x35   :  { %177 = vst [vmem:[#allocation2 + $0x48] sm:$0x3] %v169_v42  ;;  %302 = vst [vmem:[#allocation2 + $0x58] sm:$0xf] %v290_v47  ;;  %v3461_v32 = vcombine.high %v356_v29, %v356_v29  ;;  %v3460_v40 = vcombine.low %v356_v29, %v356_v29  ;;  %v4185_v41 = vld [vmem:[%s5787_s1 + $0x170] ss:$8 sps:$4 sm:$0xff]  }
  0x36   :  { %327 = vst [vmem:[#allocation2 + $0x5c] sm:$0xf] %v313_v43  ;;  %v4190_v42 = vld [vmem:[%s5787_s1 + $0x184] ss:$8 sps:$4 sm:$0xff]   ;;  %v4193_v45 = vld [vmem:[%s5787_s1 + $0x194] ss:$8 sps:$4 sm:$0xff]  }
  0x37   :  { %974 = vmatpush1.bf16.msra.mxu0 %v4154_v62  ;;  %v316_v62 = vor.u32 %v315_v23, %v261_v50  ;;  %v4203_v21 = vld [vmem:[#allocation2 + $0x54] ss:$20 sps:$4 sm:$0xff]   ;;  %v4199_v48 = vld [vmem:[%s5787_s1 + $0x1a4] ss:$8 sps:$4 sm:$0xff]   ;;  %v4200_v23 = vld [vmem:[%s5787_s1 + $0x1b0] ss:$8 sps:$4 sm:$0xff]  }
  0x38   :  { %975 = vmatprep.subr.bf16.mxu0 %v4155_v8  ;;  %v185_v8 = vrot.slane %v183_v7, 4  ;;  %v353_v27 = vld [vmem:[#allocation2 + $0x64] sm:$0xff]  ;;  %v4202_v10 = vld [vmem:[%s5787_s1 + $0x1b4] ss:$8 sps:$4 sm:$0xff]   ;;  %v4208_v47 = vld [vmem:[%s5787_s1 + $0x1d0] ss:$8 sps:$4 sm:$0xff]  }
  0x39   :  { %v317_v50 = vsel %vm4906_vm6, %v314_v58, %v316_v62  ;;  %v3455_v15 = vcombine.low %v350_v26, %v353_v27  ;;  %v4197_v51 = vld [vmem:[%s5787_s1 + $0x1a0] ss:$8 sps:$4 sm:$0xff]   ;;  %v4207_v53 = vld [vmem:[%s5787_s1 + $0x1c4] ss:$8 sps:$4 sm:$0xff]   ;;  %v4218_v58 = vld [vmem:[%s5787_s1 + $0x1f4] ss:$8 sps:$4 sm:$0xff]  }
  0x3a   :  { %328 = vst [vmem:[#allocation2 + $0x70] sm:$0xf] %v317_v50  ;;  %v187_v7 = vsel %vm4757_vm11, %v185_v8, %v186_v55  ;;  %v4210_v55 = vld [vmem:[%s5787_s1 + $0x1d4] ss:$8 sps:$4 sm:$0xff]   ;;  %v4215_v57 = vld [vmem:[%s5787_s1 + $0x1e4] ss:$8 sps:$4 sm:$0xff]  }
  0x3b   :  { %976 = vmatpush1.bf16.msra.mxu0 %v4157_v31  ;;  %197 = vst [vmem:[#allocation2 + $0x24] sm:$0xf] %v187_v7  ;;  %v4181_v31 = vld [vmem:[%s5787_s1 + $0x154] ss:$8 sps:$4 sm:$0xff]   ;;  %v4213_v49 = vld [vmem:[%s5787_s1 + $0x1e0] ss:$8 sps:$4 sm:$0xff]  }
  0x3c   :  { %977 = vmatprep.subr.bf16.mxu0 %v4158_v2  ;;  %v4179_v2 = vld [vmem:[%s5787_s1 + $0x150] ss:$8 sps:$4 sm:$0xff]   ;;  %v4219_v62 = vld [vmem:[#allocation2 + $0x8] ss:$20 sps:$4 sm:$0xff]   ;;  %v4233_v43 = vld [vmem:[%s5787_s1 + $0x224] ss:$8 sps:$4 sm:$0xff]  }
  0x3d   :  { %v4222_v63 = vld [vmem:[%s5787_s1 + $0x200] ss:$8 sps:$4 sm:$0xff]   ;;  %v4225_v36 = vld [vmem:[%s5787_s1 + $0x210] ss:$8 sps:$4 sm:$0xff]   ;;  %v4236_v50 = vld [vmem:[%s5787_s1 + $0x234] ss:$8 sps:$4 sm:$0xff]  }
  0x3e   :  { %v4228_v20 = vld [vmem:[#allocation2 + $0x34] ss:$20 sps:$4 sm:$0xff]   ;;  %v4230_v5 = vld [vmem:[#allocation2 + $0x30] ss:$20 sps:$4 sm:$0xff]   ;;  %v4239_v7 = vld [vmem:[#allocation2 + $0x58] ss:$20 sps:$4 sm:$0xff]  }
  0x3f   :  { %978 = vmatpush1.bf16.msra.mxu0 %v4160_v38  ;;  %v4187_v38 = vld [vmem:[%s5787_s1 + $0x174] ss:$8 sps:$4 sm:$0xff]   ;;  %v4231_v8 = vld [vmem:[%s5787_s1 + $0x220] ss:$8 sps:$4 sm:$0xff]   ;;  %v4234_v56 = vld [vmem:[%s5787_s1 + $0x230] ss:$8 sps:$4 sm:$0xff]  }
  0x40   :  { %1018 = vmatprep.subr.bf16.mxu0 %v4166_v46  ;;  %v4191_v46 = vld [vmem:[%s5787_s1 + $0x190] ss:$8 sps:$4 sm:$0xff]   ;;  %v4242_v6 = vld [vmem:[%s5787_s1 + $0x244] ss:$8 sps:$4 sm:$0xff]   ;;  %v4240_v9 = vld [vmem:[%s5787_s1 + $0x240] ss:$8 sps:$4 sm:$0xff]  }
  0x41   :  { %v357_v17 = vld [vmem:[#allocation2 + $0x80] sm:$0xff]  ;;  %v4243_v16 = vld [vmem:[%s5787_s1 + $0x250] ss:$8 sps:$4 sm:$0xff]  }
  0x42   :  { %980 = vmatmul.mubr.bf16.vlgmr.msra.gmra.mrb[0].mxu0 %v4161_v59  ;;  %v4216_v59 = vld [vmem:[%s5787_s1 + $0x1f0] ss:$8 sps:$4 sm:$0xff]   ;;  %v4250_v18 = vld [vmem:[%s5787_s1 + $0x264] ss:$8 sps:$4 sm:$0xff]  }
  0x43   :  { %1019 = vmatpush1.bf16.msra.mxu0 %v4164_v60  ;;  %989 = vmatprep.mubr.bf16.mxu0 %v4194_v1  ;;  %v4224_v60 = vld [vmem:[%s5787_s1 + $0x204] ss:$8 sps:$4 sm:$0xff]   ;;  %v4227_v1 = vld [vmem:[%s5787_s1 + $0x214] ss:$8 sps:$4 sm:$0xff]  }
  0x44   :  { %1020 = vmatprep.subr.bf16.mxu0 %v4169_v37  ;;  %v4237_v37 = vld [vmem:[#allocation2 + $0x5c] ss:$20 sps:$4 sm:$0xff]  }
  0x47   :  { %1021 = vmatpush1.bf16.msra.mxu0 %v4167_v12  ;;  %v4245_v12 = vld [vmem:[%s5787_s1 + $0x254] ss:$8 sps:$4 sm:$0xff]  }
  0x48   :  { %1022 = vmatprep.subr.bf16.mxu0 %v4172_v13  ;;  %v3463_v13 = vcombine.high %v357_v17, %v357_v17 }
  0x4a   :  { %990 = vmatmul.mubr.bf16.gmra.mrb[4].mxu0 %v4196_v4  ;;  %v3462_v4 = vcombine.low %v357_v17, %v357_v17 }
  0x4b   :  { %1023 = vmatpush1.bf16.msra.mxu0 %v4170_v19  ;;  %999 = vmatprep.mubr.bf16.mxu0 %v4203_v21  ;;  %v4248_v19 = vld [vmem:[%s5787_s1 + $0x260] ss:$8 sps:$4 sm:$0xff]   ;;  %v4253_v21 = vld [vmem:[%s5787_s1 + $0x274] ss:$8 sps:$4 sm:$0xff]  }
  0x4c   :  { %1024 = vmatprep.subr.bf16.mxu0 %v4175_v24 }
  0x4f   :  { %1025 = vmatpush1.bf16.msra.mxu0 %v4173_v25 }
  0x50   :  { %1026 = vmatprep.subr.bf16.mxu0 %v4178_v28 }
  0x52   :  { %1000 = vmatmul.mubr.bf16.gmra.mrb[8].mxu0 %v3455_v15 }
  0x53   :  { %1027 = vmatpush1.bf16.msra.mxu0 %v4176_v30  ;;  %1009 = vmatprep.mubr.bf16.mxu0 %v3461_v32 }
  0x54   :  { %1028 = vmatprep.subr.bf16.mxu0 %v4181_v31 }
  0x57   :  { %1029 = vmatpush1.bf16.msra.mxu0 %v4179_v2 }
  0x58   :  { %1030 = vmatprep.subr.bf16.mxu0 %v4184_v14 }
  0x5a   :  { %1010 = vmatmul.mubr.bf16.gmra.mrb[12].mxu0 %v3460_v40 }
  0x5b   :  { %1031 = vmatpush1.bf16.msra.mxu0 %v4182_v34  ;;  %1050 = vmatprep.mubr.bf16.mxu0 %v4221_v35 }
  0x5c   :  { %1032 = vmatprep.subr.bf16.mxu0 %v4187_v38 }
  0x5f   :  { %1033 = vmatpush1.bf16.msra.mxu0 %v4185_v41 }
  0x60   :  { %1034 = vmatprep.subr.bf16.mxu0 %v4190_v42 }
  0x63   :  { %1035 = vmatpush1.bf16.msra.mxu0 %v4188_v44 }
  0x64   :  { %1036 = vmatprep.subr.bf16.mxu0 %v4193_v45 }
  0x67   :  { %1037 = vmatpush1.bf16.msra.mxu0 %v4191_v46 }
  0x68   :  { %1038 = vmatprep.subr.bf16.mxu0 %v4199_v48 }
  0x6b   :  { %1039 = vmatpush1.bf16.msra.mxu0 %v4197_v51 }
  0x6c   :  { %1040 = vmatprep.subr.bf16.mxu0 %v4202_v10 }
  0x6f   :  { %1041 = vmatpush1.bf16.msra.mxu0 %v4200_v23 }
  0x70   :  { %1042 = vmatprep.subr.bf16.mxu0 %v4207_v53 }
  0x73   :  { %1043 = vmatpush1.bf16.msra.mxu0 %v4205_v54 }
  0x74   :  { %1044 = vmatprep.subr.bf16.mxu0 %v4210_v55 }
  0x77   :  { %1045 = vmatpush1.bf16.msra.mxu0 %v4208_v47 }
  0x78   :  { %1046 = vmatprep.subr.bf16.mxu0 %v4215_v57 }
  0x7b   :  { %1047 = vmatpush1.bf16.msra.mxu0 %v4213_v49 }
  0x7c   :  { %1048 = vmatprep.subr.bf16.mxu0 %v4218_v58 }
  0x7f   :  { %1049 = vmatpush1.bf16.msra.mxu0 %v4216_v59 }
  0x80   :  { %1089 = vmatprep.subr.bf16.mxu0 %v4224_v60 }
  0x82   :  { %1051 = vmatmul.mubr.bf16.vlgmr.msra.gmra.mrb[0].mxu0 %v4219_v62 }
  0x83   :  { %1090 = vmatpush1.bf16.msra.mxu0 %v4222_v63  ;;  %1060 = vmatprep.mubr.bf16.mxu0 %v4228_v20 }
  0x84   :  { %1091 = vmatprep.subr.bf16.mxu0 %v4227_v1 }
  0x87   :  { %1092 = vmatpush1.bf16.msra.mxu0 %v4225_v36 }
  0x88   :  { %1093 = vmatprep.subr.bf16.mxu0 %v4233_v43 }
  0x8a   :  { %1061 = vmatmul.mubr.bf16.gmra.mrb[4].mxu0 %v4230_v5 }
  0x8b   :  { %1094 = vmatpush1.bf16.msra.mxu0 %v4231_v8  ;;  %1070 = vmatprep.mubr.bf16.mxu0 %v4237_v37 }
  0x8c   :  { %1095 = vmatprep.subr.bf16.mxu0 %v4236_v50 }
  0x8f   :  { %1096 = vmatpush1.bf16.msra.mxu0 %v4234_v56 }
  0x90   :  { %1097 = vmatprep.subr.bf16.mxu0 %v4242_v6 }
  0x92   :  { %1071 = vmatmul.mubr.bf16.gmra.mrb[8].mxu0 %v4239_v7 }
  0x93   :  { %1098 = vmatpush1.bf16.msra.mxu0 %v4240_v9  ;;  %1080 = vmatprep.mubr.bf16.mxu0 %v3463_v13 }
  0x94   :  { %1099 = vmatprep.subr.bf16.mxu0 %v4245_v12 }
  0x97   :  { %1100 = vmatpush1.bf16.msra.mxu0 %v4243_v16 }
  0x98   :  { %1101 = vmatprep.subr.bf16.mxu0 %v4250_v18 }
  0x99   :  { %20 = vsyncpa [#allocation5], 0  ;;  %v4251_v24 = vld [vmem:[%s5787_s1 + $0x270] ss:$8 sps:$4 sm:$0xff]   ;;  %v4256_v27 = vld [vmem:[#allocation2 + $0x60] ss:$20 sps:$4 sm:$0xff]   ;;  %v441_v29 = vlaneseq }
  0x9a   :  { %1081 = vmatmul.mubr.bf16.gmra.mrb[12].mxu0 %v3462_v4  ;;  %v4254_v25 = vld [vmem:[#allocation2 + $0x10] ss:$20 sps:$4 sm:$0xff]   ;;  %v4255_v26 = vld [vmem:[#allocation2 + $0x38] ss:$20 sps:$4 sm:$0xff]   ;;  %v4257_v28 = vld [vmem:[#allocation2 + $0x88] ss:$0 sps:$4 sm:$0xff]  }
  0x9b   :  { %1102 = vmatpush1.bf16.msra.mxu0 %v4248_v19  ;;  %1121 = vmatprep.mubr.bf16.mxu0 %v4536_v3  ;;  %v5083_v30 = vshrl.u32 %v441_v29, 7  ;;  %v439_v15 = vld [vmem:[%s5788_s2] sm:$0x3]  ;;  %vm1220_vm7 = vcmask 1043456   ;;  %vm1207_vm9 = vcmask 457728   ;;  %vm1466_vm12 = vcmask 326656  }
  0x9c   :  { %1103 = vmatprep.subr.bf16.mxu0 %v4253_v21  ;;  %v4345_v22 = vld [vmem:[%s5791_s5 + $0x100] ss:$8 sps:$4 sm:$0xff]   ;;  %v4349_v52 = vld [vmem:[%s5791_s5 + $0x110] ss:$8 sps:$4 sm:$0xff]   ;;  %vm3268_vm13 = vcmask 982016  }
  0x9d   :  { %v443_v31 = vsub.s32 0, %v5083_v30  ;;  %v447_v32 = vsub.s32 1, %v5083_v30 }
  0x9f   :  { %1104 = vmatpush1.bf16.msra.mxu0 %v4251_v24  ;;  %v444_v2 = vrot.slane %v439_v15, %v443_v31  ;;  %v448_v14 = vrot.slane %v439_v15, %v447_v32 }
  0xa2   :  { %1122 = vmatmul.mubr.bf16.vlgmr.msra.gmra.mrb[0].mxu0 %v4254_v25 }
  0xa3   :  { %1131 = vmatprep.mubr.bf16.mxu0 %v4536_v3 }
  0xaa   :  { %1132 = vmatmul.mubr.bf16.gmra.mrb[4].mxu0 %v4255_v26 }
  0xab   :  { %1141 = vmatprep.mubr.bf16.mxu0 %v4536_v3 }
  0xb2   :  { %1142 = vmatmul.mubr.bf16.gmra.mrb[8].mxu0 %v4256_v27 }
  0xb3   :  { %1151 = vmatprep.mubr.bf16.mxu0 %v4536_v3 }
  0xba   :  { %1152 = vmatmul.mubr.bf16.gmra.mrb[12].mxu0 %v4257_v28 }
  0xbb   :  { %2446 = vmatprep.mubr.bf16.mxu0 %v4536_v3 }
 0x175   :  { %v1123_v34 = vpop.f32.mrb[0].mxu0 }
 0x176   :  { %v4041_v35 = vadd.f32 %v1123_v34, %v444_v2  ;;  %v1125_v38 = vpop.f32.mrb[1].mxu0 }
 0x177   :  { %v4042_v40 = vadd.f32 %v1125_v38, %v448_v14  ;;  %v1127_v41 = vpop.f32.mrb[2].mxu0 }
 0x178   :  { %v4043_v42 = vadd.f32 %v1127_v41, %v444_v2  ;;  %v1129_v44 = vpop.f32.mrb[3].mxu0  ;;  %v1160_v46 = vmax.f32 %v4041_v35, 0.0  ;;  %v4264_v35 = vld [vmem:[%s5790_s4 + $0x4] ss:$8 sps:$4 sm:$0xff]   ;;  %v4265_v41 = vld [vmem:[%s5790_s4 + $0x10] ss:$8 sps:$4 sm:$0xff]  }
 0x179   :  { %v4044_v45 = vadd.f32 %v1129_v44, %v448_v14  ;;  %v1161_v51 = vmax.f32 %v4042_v40, 0.0  ;;  %v4267_v40 = vld [vmem:[%s5790_s4 + $0x14] ss:$8 sps:$4 sm:$0xff]   ;;  %v4259_v44 = vld [vmem:[%s5789_s3 + $0x8] sm:$0xff]  }
 0x17a   :  { %v1162_v48 = vmax.f32 %v4043_v42, 0.0  ;;  %v4270_v42 = vld [vmem:[%s5790_s4 + $0x24] ss:$8 sps:$4 sm:$0xff]  }
 0x17b   :  { %v1163_v10 = vmax.f32 %v4044_v45, 0.0  ;;  %v4268_v45 = vld [vmem:[%s5790_s4 + $0x20] ss:$8 sps:$4 sm:$0xff]  }
 0x17c   :  { %v1181_v23 = vpack.c.bf16 %v1162_v48, %v1160_v46  ;;  %v4273_v46 = vld [vmem:[%s5790_s4 + $0x34] ss:$8 sps:$4 sm:$0xff]   ;;  %v4271_v48 = vld [vmem:[%s5790_s4 + $0x30] ss:$8 sps:$4 sm:$0xff]  }
 0x17d   :  { %v1133_v53 = vpop.f32.mrb[4].mxu0  ;;  %v1182_v54 = vpack.c.bf16 %v1163_v10, %v1161_v51  ;;  %v4260_v51 = vld [vmem:[%s5789_s3 + $0x10] sm:$0xff]   ;;  %v4261_v10 = vld [vmem:[%s5789_s3 + $0x18] ss:$0 sps:$4 sm:$0xff]  }
 0x17e   :  { %v4045_v55 = vadd.f32 %v1133_v53, %v444_v2  ;;  %v1135_v47 = vpop.f32.mrb[5].mxu0  ;;  %v4274_v53 = vld [vmem:[%s5790_s4 + $0x40] ss:$8 sps:$4 sm:$0xff]  }
 0x17f   :  { %v4046_v57 = vadd.f32 %v1135_v47, %v448_v14  ;;  %v1137_v49 = vpop.f32.mrb[6].mxu0  ;;  %1227 = vmatprep.subr.bf16.mxu1 %v1182_v54  ;;  %v4279_v54 = vld [vmem:[%s5790_s4 + $0x54] ss:$8 sps:$4 sm:$0xff]   ;;  %v4282_v47 = vld [vmem:[%s5790_s4 + $0x64] ss:$8 sps:$4 sm:$0xff]  }
 0x180   :  { %v4047_v58 = vadd.f32 %v1137_v49, %v444_v2  ;;  %v1139_v59 = vpop.f32.mrb[7].mxu0  ;;  %1228 = vmatpush1.bf16.msra.mxu1 %v1181_v23  ;;  %v1164_v62 = vmax.f32 %v4045_v55, 0.0  ;;  %v4276_v23 = vld [vmem:[%s5790_s4 + $0x44] ss:$8 sps:$4 sm:$0xff]   ;;  %v4277_v55 = vld [vmem:[%s5790_s4 + $0x50] ss:$8 sps:$4 sm:$0xff]  }
 0x181   :  { %v4048_v60 = vadd.f32 %v1139_v59, %v448_v14  ;;  %v1165_v20 = vmax.f32 %v4046_v57, 0.0  ;;  %v4280_v57 = vld [vmem:[%s5790_s4 + $0x60] ss:$8 sps:$4 sm:$0xff]   ;;  %v4285_v49 = vld [vmem:[%s5790_s4 + $0x74] ss:$8 sps:$4 sm:$0xff]  }
 0x182   :  { %v1166_v63 = vmax.f32 %v4047_v58, 0.0  ;;  %v4283_v58 = vld [vmem:[%s5790_s4 + $0x70] ss:$8 sps:$4 sm:$0xff]   ;;  %v4288_v59 = vld [vmem:[%s5790_s4 + $0x84] ss:$8 sps:$4 sm:$0xff]  }
 0x183   :  { %v1167_v1 = vmax.f32 %v4048_v60, 0.0  ;;  %v4286_v60 = vld [vmem:[%s5790_s4 + $0x80] ss:$8 sps:$4 sm:$0xff]  }
 0x184   :  { %v1183_v36 = vpack.c.bf16 %v1166_v63, %v1164_v62  ;;  %v4291_v62 = vld [vmem:[%s5790_s4 + $0x94] ss:$8 sps:$4 sm:$0xff]   ;;  %v4289_v63 = vld [vmem:[%s5790_s4 + $0x90] ss:$8 sps:$4 sm:$0xff]  }
 0x185   :  { %v1184_v43 = vpack.c.bf16 %v1167_v1, %v1165_v20  ;;  %v1143_v5 = vpop.f32.mrb[8].mxu0  ;;  %v1356_v20 = vld [vmem:[%s5790_s4 + $0xa0] sm:$0xff] }
 0x186   :  { %v4049_v8 = vadd.f32 %v1143_v5, %v444_v2  ;;  %v1145_v37 = vpop.f32.mrb[9].mxu0  ;;  %v3575_v1 = vcombine.high %v1356_v20, %v1356_v20  ;;  %v4296_v5 = vld [vmem:[%s5791_s5 + $0x4] ss:$8 sps:$4 sm:$0xff]  }
 0x187   :  { %v4050_v50 = vadd.f32 %v1145_v37, %v448_v14  ;;  %v1147_v56 = vpop.f32.mrb[10].mxu0  ;;  %1229 = vmatprep.subr.bf16.mxu1 %v1184_v43 }
 0x188   :  { %v4051_v6 = vadd.f32 %v1147_v56, %v444_v2  ;;  %v1149_v17 = vpop.f32.mrb[11].mxu0  ;;  %1230 = vmatpush1.bf16.msra.mxu1 %v1183_v36  ;;  %v1168_v9 = vmax.f32 %v4049_v8, 0.0  ;;  %v3574_v36 = vcombine.low %v1356_v20, %v1356_v20  ;;  %v4303_v20 = vld [vmem:[%s5791_s5 + $0x30] ss:$8 sps:$4 sm:$0xff]  }
 0x189   :  { %v4052_v7 = vadd.f32 %v1149_v17, %v448_v14  ;;  %v1169_v13 = vmax.f32 %v4050_v50, 0.0 }
 0x18a   :  { %v1170_v12 = vmax.f32 %v4051_v6, 0.0  ;;  %v1474_v43 = vsel %vm1220_vm7, %v3574_v36, 0  ;;  %v4306_v36 = vld [vmem:[%s5791_s5 + $0x40] ss:$8 sps:$4 sm:$0xff]  }
 0x18b   :  { %v1171_v16 = vmax.f32 %v4052_v7, 0.0 }
 0x18c   :  { %v1185_v18 = vpack.c.bf16 %v1170_v12, %v1168_v9 }
 0x18d   :  { %v1186_v19 = vpack.c.bf16 %v1171_v16, %v1169_v13  ;;  %v1153_v4 = vpop.f32.mrb[12].mxu0 }
 0x18e   :  { %v4053_v21 = vadd.f32 %v1153_v4, %v444_v2  ;;  %v1155_v24 = vpop.f32.mrb[13].mxu0  ;;  %v4258_v2 = vld [vmem:[%s5789_s3] sm:$0xff]  }
 0x18f   :  { %v4054_v25 = vadd.f32 %v1155_v24, %v448_v14  ;;  %v1157_v26 = vpop.f32.mrb[14].mxu0  ;;  %1231 = vmatprep.subr.bf16.mxu1 %v1186_v19  ;;  %v4262_v14 = vld [vmem:[%s5790_s4] ss:$8 sps:$4 sm:$0xff]  }
 0x190   :  { %v1172_v27 = vmax.f32 %v4053_v21, 0.0  ;;  %v1158_v28 = vpop.f32.mrb[15].mxu0  ;;  %1232 = vmatpush1.bf16.msra.mxu1 %v1185_v18 }
 0x191   :  { %v1173_v29 = vmax.f32 %v4054_v25, 0.0 }
 0x192   :  { %v1187_v15 = vpack.c.bf16 %v1172_v27, %v1172_v27 }
 0x193   :  { %v1188_v34 = vpack.c.bf16 %v1173_v29, %v1173_v29 }
 0x194   :  { %v1222_v38 = vsel %vm1220_vm7, %v1187_v15, 0 }
 0x195   :  { %3549 = vmatprep.subr.msk.bf16.mxu1 %vm1220_vm7, %v1188_v34 }
 0x196   :  { %1234 = vmatpush1.bf16.msra.mxu1 %v1222_v38 }
 0x197   :  { %1479 = vmatprep.subr.bf16.mxu1 %v4264_v35 }
 0x199   :  { %3550 = vmatmul.mubr.msk.bf16.vlgmr.msra.gmra.mrb[0].mxu1 %vm1207_vm9, %v4258_v2 }
 0x19a   :  { %1269 = vmatprep.mubr.bf16.mxu1 %v4536_v3  ;;  %1480 = vmatpush1.bf16.msra.mxu1 %v4262_v14 }
 0x19b   :  { %1481 = vmatprep.subr.bf16.mxu1 %v4267_v40 }
 0x19e   :  { %1482 = vmatpush1.bf16.msra.mxu1 %v4265_v41 }
 0x19f   :  { %1483 = vmatprep.subr.bf16.mxu1 %v4270_v42 }
 0x1a1   :  { %3551 = vmatmul.mubr.msk.bf16.gmra.mrb[4].mxu1 %vm1207_vm9, %v4259_v44 }
 0x1a2   :  { %1279 = vmatprep.mubr.bf16.mxu1 %v4536_v3  ;;  %1484 = vmatpush1.bf16.msra.mxu1 %v4268_v45  ;;  %v4294_v45 = vld [vmem:[%s5791_s5] ss:$8 sps:$4 sm:$0xff]  }
 0x1a3   :  { %1485 = vmatprep.subr.bf16.mxu1 %v4273_v46 }
 0x1a6   :  { %1486 = vmatpush1.bf16.msra.mxu1 %v4271_v48 }
 0x1a7   :  { %1487 = vmatprep.subr.bf16.mxu1 %v4276_v23 }
 0x1a9   :  { %3552 = vmatmul.mubr.msk.bf16.gmra.mrb[8].mxu1 %vm1207_vm9, %v4260_v51  ;;  %v4299_v51 = vld [vmem:[%s5791_s5 + $0x14] ss:$8 sps:$4 sm:$0xff]  }
 0x1aa   :  { %1289 = vmatprep.mubr.bf16.mxu1 %v4536_v3  ;;  %1488 = vmatpush1.bf16.msra.mxu1 %v4274_v53 }
 0x1ab   :  { %1489 = vmatprep.subr.bf16.mxu1 %v4279_v54 }
 0x1ae   :  { %1490 = vmatpush1.bf16.msra.mxu1 %v4277_v55 }
 0x1af   :  { %1491 = vmatprep.subr.bf16.mxu1 %v4282_v47 }
 0x1b1   :  { %3553 = vmatmul.mubr.msk.bf16.gmra.mrb[12].mxu1 %vm1207_vm9, %v4261_v10 }
 0x1b2   :  { %1492 = vmatpush1.bf16.msra.mxu1 %v4280_v57 }
 0x1b3   :  { %1493 = vmatprep.subr.bf16.mxu1 %v4285_v49  ;;  %v4297_v49 = vld [vmem:[%s5791_s5 + $0x10] ss:$8 sps:$4 sm:$0xff]  }
 0x1b6   :  { %1494 = vmatpush1.bf16.msra.mxu1 %v4283_v58 }
 0x1b7   :  { %1495 = vmatprep.subr.bf16.mxu1 %v4288_v59  ;;  %v4302_v59 = vld [vmem:[%s5791_s5 + $0x24] ss:$8 sps:$4 sm:$0xff]  }
 0x1ba   :  { %1496 = vmatpush1.bf16.msra.mxu1 %v4286_v60 }
 0x1bb   :  { %1497 = vmatprep.subr.bf16.mxu1 %v4291_v62  ;;  %v4300_v62 = vld [vmem:[%s5791_s5 + $0x20] ss:$8 sps:$4 sm:$0xff]  }
 0x1be   :  { %1498 = vmatpush1.bf16.msra.mxu1 %v4289_v63  ;;  %v4305_v63 = vld [vmem:[%s5791_s5 + $0x34] ss:$8 sps:$4 sm:$0xff]  }
 0x1bf   :  { %3576 = vmatprep.subr.msk.bf16.mxu1 %vm1220_vm7, %v3575_v1  ;;  %v4308_v1 = vld [vmem:[%s5791_s5 + $0x44] ss:$8 sps:$4 sm:$0xff]  }
 0x1c2   :  { %1500 = vmatpush1.bf16.msra.mxu1 %v1474_v43  ;;  %v4311_v43 = vld [vmem:[%s5791_s5 + $0x54] ss:$8 sps:$4 sm:$0xff]  }
 0x1c3   :  { %2226 = vmatprep.subr.bf16.mxu1 %v4296_v5  ;;  %v4309_v5 = vld [vmem:[%s5791_s5 + $0x50] ss:$8 sps:$4 sm:$0xff]  }
 0x26c   :  { %v1261_v8 = vpop.f32.mrb[0].mxu1 }
 0x26d   :  { %v1263_v37 = vpop.f32.mrb[1].mxu1 }
 0x26e   :  { %v1265_v50 = vpop.f32.mrb[2].mxu1 }
 0x26f   :  { %v1267_v56 = vpop.f32.mrb[3].mxu1 }
 0x274   :  { %v1271_v6 = vpop.f32.mrb[4].mxu1 }
 0x275   :  { %v1273_v17 = vpop.f32.mrb[5].mxu1 }
 0x276   :  { %v1275_v7 = vpop.f32.mrb[6].mxu1 }
 0x277   :  { %v1277_v9 = vpop.f32.mrb[7].mxu1  ;;  %v1306_v13 = vrot.slane %v1275_v7, 4 }
 0x278   :  { %v1309_v19 = vrot.slane %v1277_v9, 4 }
 0x27c   :  { %v1281_v12 = vpop.f32.mrb[8].mxu1 }
 0x27d   :  { %v1307_v16 = vrot.slane %v1281_v12, 4  ;;  %v1283_v18 = vpop.f32.mrb[9].mxu1  ;;  %v4326_v12 = vld [vmem:[%s5791_s5 + $0xa4] ss:$8 sps:$4 sm:$0xff]  }
 0x27e   :  { %v1310_v4 = vrot.slane %v1283_v18, 4  ;;  %v1285_v21 = vpop.f32.mrb[10].mxu1  ;;  %v4327_v18 = vld [vmem:[%s5791_s5 + $0xb0] ss:$8 sps:$4 sm:$0xff]  }
 0x27f   :  { %v1308_v24 = vsel %vm1220_vm7, %v1306_v13, %v1307_v16  ;;  %v1312_v25 = vrot.slane %v1285_v21, 4  ;;  %v1287_v26 = vpop.f32.mrb[11].mxu1  ;;  %v4324_v13 = vld [vmem:[%s5791_s5 + $0xa0] ss:$8 sps:$4 sm:$0xff]   ;;  %v4335_v21 = vld [vmem:[%s5791_s5 + $0xd4] ss:$8 sps:$4 sm:$0xff]  }
 0x280   :  { %v1328_v27 = vmax.f32 %v1261_v8, %v1308_v24  ;;  %v1311_v28 = vsel %vm1220_vm7, %v1309_v19, %v1310_v4  ;;  %v1314_v29 = vrot.slane %v1287_v26, 4  ;;  %v4314_v8 = vld [vmem:[%s5791_s5 + $0x64] ss:$8 sps:$4 sm:$0xff]   ;;  %v4333_v24 = vld [vmem:[%s5791_s5 + $0xd0] ss:$8 sps:$4 sm:$0xff]  }
 0x281   :  { %v1329_v15 = vmax.f32 %v1263_v37, %v1311_v28  ;;  %v1313_v34 = vsel %vm1220_vm7, %v1307_v16, %v1312_v25  ;;  %v4312_v37 = vld [vmem:[%s5791_s5 + $0x60] ss:$8 sps:$4 sm:$0xff]   ;;  %v4329_v16 = vld [vmem:[%s5791_s5 + $0xb4] ss:$8 sps:$4 sm:$0xff]   ;;  %v4332_v19 = vld [vmem:[%s5791_s5 + $0xc4] ss:$8 sps:$4 sm:$0xff]  }
 0x282   :  { %v1330_v35 = vmax.f32 %v1265_v50, %v1313_v34  ;;  %v1315_v38 = vsel %vm1220_vm7, %v1310_v4, %v1314_v29  ;;  %v4317_v50 = vld [vmem:[%s5791_s5 + $0x74] ss:$8 sps:$4 sm:$0xff]   ;;  %v4330_v4 = vld [vmem:[%s5791_s5 + $0xc0] ss:$8 sps:$4 sm:$0xff]  }
 0x283   :  { %v1331_v2 = vmax.f32 %v1267_v56, %v1315_v38  ;;  %v4315_v56 = vld [vmem:[%s5791_s5 + $0x70] ss:$8 sps:$4 sm:$0xff]   ;;  %v4336_v26 = vld [vmem:[%s5791_s5 + $0xe0] ss:$8 sps:$4 sm:$0xff]   ;;  %v4341_v28 = vld [vmem:[%s5791_s5 + $0xf4] ss:$8 sps:$4 sm:$0xff]  }
 0x284   :  { %v1357_v14 = vpack.c.bf16 %v1330_v35, %v1328_v27  ;;  %v1291_v40 = vpop.f32.mrb[12].mxu1  ;;  %v4339_v27 = vld [vmem:[%s5791_s5 + $0xf0] ss:$8 sps:$4 sm:$0xff]  }
 0x285   :  { %v1316_v41 = vrot.slane %v1291_v40, 4  ;;  %v1293_v42 = vpop.f32.mrb[13].mxu1  ;;  %v1358_v44 = vpack.c.bf16 %v1331_v2, %v1329_v15 }
 0x286   :  { %v1318_v46 = vrot.slane %v1293_v42, 4  ;;  %v1295_v48 = vpop.f32.mrb[14].mxu1 }
 0x287   :  { %v1317_v10 = vsel %vm1220_vm7, %v1312_v25, %v1316_v41  ;;  %v1334_v23 = vmax.f32 %v1275_v7, %v1316_v41  ;;  %v1296_v53 = vpop.f32.mrb[15].mxu1  ;;  %3577 = vmatprep.mubr.msk.bf16.mxu1 %vm1466_vm12, %v1358_v44  ;;  %v4323_v7 = vld [vmem:[%s5791_s5 + $0x94] ss:$8 sps:$4 sm:$0xff]   ;;  %v4338_v25 = vld [vmem:[%s5791_s5 + $0xe4] ss:$8 sps:$4 sm:$0xff]  }
 0x288   :  { %v1319_v54 = vsel %vm1220_vm7, %v1314_v29, %v1318_v46  ;;  %v1335_v55 = vmax.f32 %v1277_v9, %v1318_v46  ;;  %1512 = vmatmul.mubr.bf16.vlgmr.msra.gmra.mrb[16].mxu1 %v1357_v14  ;;  %v1332_v47 = vmax.f32 %v1271_v6, %v1317_v10  ;;  %v4320_v6 = vld [vmem:[%s5791_s5 + $0x84] ss:$8 sps:$4 sm:$0xff]   ;;  %v4321_v9 = vld [vmem:[%s5791_s5 + $0x90] ss:$8 sps:$4 sm:$0xff]  }
 0x289   :  { %v1333_v57 = vmax.f32 %v1273_v17, %v1319_v54  ;;  %2227 = vmatpush1.bf16.msra.mxu1 %v4294_v45  ;;  %v4318_v17 = vld [vmem:[%s5791_s5 + $0x80] ss:$8 sps:$4 sm:$0xff]   ;;  %v4347_v29 = vld [vmem:[%s5791_s5 + $0x104] ss:$8 sps:$4 sm:$0xff]  }
 0x28a   :  { %v1359_v58 = vpack.c.bf16 %v1334_v23, %v1332_v47  ;;  %2228 = vmatprep.subr.bf16.mxu1 %v4299_v51 }
 0x28b   :  { %v1360_v60 = vpack.c.bf16 %v1335_v55, %v1333_v57 }
 0x28d   :  { %3578 = vmatprep.mubr.msk.bf16.mxu1 %vm1466_vm12, %v1360_v60  ;;  %2229 = vmatpush1.bf16.msra.mxu1 %v4297_v49 }
 0x28e   :  { %2230 = vmatprep.subr.bf16.mxu1 %v4302_v59 }
 0x290   :  { %1522 = vmatmul.mubr.bf16.gmra.mrb[20].mxu1 %v1359_v58 }
 0x291   :  { %2231 = vmatpush1.bf16.msra.mxu1 %v4300_v62 }
 0x292   :  { %2232 = vmatprep.subr.bf16.mxu1 %v4305_v63 }
 0x295   :  { %2233 = vmatpush1.bf16.msra.mxu1 %v4303_v20 }
 0x296   :  { %2234 = vmatprep.subr.bf16.mxu1 %v4308_v1 }
 0x299   :  { %2235 = vmatpush1.bf16.msra.mxu1 %v4306_v36 }
 0x29a   :  { %2236 = vmatprep.subr.bf16.mxu1 %v4311_v43 }
 0x29d   :  { %2237 = vmatpush1.bf16.msra.mxu1 %v4309_v5 }
 0x29e   :  { %2238 = vmatprep.subr.bf16.mxu1 %v4314_v8 }
 0x2a1   :  { %2239 = vmatpush1.bf16.msra.mxu1 %v4312_v37 }
 0x2a2   :  { %2240 = vmatprep.subr.bf16.mxu1 %v4317_v50 }
 0x2a5   :  { %2241 = vmatpush1.bf16.msra.mxu1 %v4315_v56 }
 0x2a6   :  { %2242 = vmatprep.subr.bf16.mxu1 %v4320_v6 }
 0x2a9   :  { %2243 = vmatpush1.bf16.msra.mxu1 %v4318_v17 }
 0x2aa   :  { %2244 = vmatprep.subr.bf16.mxu1 %v4323_v7 }
 0x2ad   :  { %2245 = vmatpush1.bf16.msra.mxu1 %v4321_v9 }
 0x2ae   :  { %2246 = vmatprep.subr.bf16.mxu1 %v4326_v12 }
 0x2b1   :  { %2247 = vmatpush1.bf16.msra.mxu1 %v4324_v13 }
 0x2b2   :  { %2248 = vmatprep.subr.bf16.mxu1 %v4329_v16 }
 0x2b5   :  { %2249 = vmatpush1.bf16.msra.mxu1 %v4327_v18 }
 0x2b6   :  { %2250 = vmatprep.subr.bf16.mxu1 %v4332_v19 }
 0x2b9   :  { %2251 = vmatpush1.bf16.msra.mxu1 %v4330_v4 }
 0x2ba   :  { %2252 = vmatprep.subr.bf16.mxu1 %v4335_v21 }
 0x2bd   :  { %2253 = vmatpush1.bf16.msra.mxu1 %v4333_v24 }
 0x2be   :  { %2254 = vmatprep.subr.bf16.mxu1 %v4338_v25 }
 0x2c1   :  { %2255 = vmatpush1.bf16.msra.mxu1 %v4336_v26 }
 0x2c2   :  { %2256 = vmatprep.subr.bf16.mxu1 %v4341_v28 }
 0x2c5   :  { %2257 = vmatpush1.bf16.msra.mxu1 %v4339_v27 }
 0x2c6   :  { %2277 = vmatprep.subr.bf16.mxu1 %v4347_v29 }
 0x35b   :  { %v1513_v15 = vpop.f32.mrb[16].mxu1 }
 0x35c   :  { %v1515_v34 = vpop.f32.mrb[17].mxu1 }
 0x35d   :  { %v1532_v35 = vmax.f32 %v1513_v15, %v1515_v34  ;;  %v1517_v38 = vpop.f32.mrb[18].mxu1 }
 0x35e   :  { %v1519_v2 = vpop.f32.mrb[19].mxu1 }
 0x35f   :  { %v3837_v14 = vpack.c.bf16 %v1532_v35, %v1532_v35  ;;  %v1533_v40 = vmax.f32 %v1517_v38, %v1519_v2 }
 0x361   :  { %1544 = vst [vmem:[#allocation3] sm:$0xf] %v3837_v14  ;;  %v1547_v41 = vshrl.u32 %v3837_v14, 16  ;;  %v1550_v42 = vshll.u32 %v3837_v14, 16  ;;  %v3581_v44 = vrot.slane %v3837_v14, 9  ;;  %v3838_v45 = vpack.c.bf16 %v1533_v40, %v1533_v40 }
 0x362   :  { %v3582_v59 = vrot.slane %v3837_v14, 10 }
 0x363   :  { %v1549_v46 = vrot.slane %v1547_v41, 4  ;;  %v1552_v48 = vrot.slane %v1550_v42, 5  ;;  %v1578_v51 = vrot.slane %v1547_v41, 5  ;;  %v1579_v10 = vrot.slane %v1550_v42, 6  ;;  %v1523_v23 = vpop.f32.mrb[20].mxu1 }
 0x364   :  { %1545 = vst [vmem:[#allocation3 + $0x14] sm:$0x1] %v3838_v45  ;;  %v1556_v53 = vshll.u32 %v3838_v45, 16  ;;  %v5287_v54 = vshrl.u32 %v3838_v45, 16  ;;  %v1571_v55 = vrot.slane %v3838_v45, 5  ;;  %v1593_v47 = vrot.slane %v3838_v45, 6 }
 0x365   :  { %v1525_v57 = vpop.f32.mrb[21].mxu1  ;;  %v1553_v49 = vor.u32 %v1552_v48, %v1549_v46  ;;  %v1580_v58 = vor.u32 %v1579_v10, %v1578_v51  ;;  %v3585_v16 = vrot.slane %v3838_v45, 10 }
 0x366   :  { %v1534_v60 = vmax.f32 %v1523_v23, %v1525_v57  ;;  %v1527_v62 = vpop.f32.mrb[22].mxu1  ;;  %v1558_v63 = vrot.slane %v1556_v53, 5  ;;  %v1562_v20 = vrot.slane %v5287_v54, 4  ;;  %v1572_v1 = vsel %vm4694_vm4, %v3581_v44, %v1571_v55  ;;  %v4352_v57 = vld [vmem:[%s5791_s5 + $0x120] ss:$8 sps:$4 sm:$0xff]  }
 0x367   :  { %v1573_v36 = vrot.slane %v1571_v55, 4  ;;  %v1529_v43 = vpop.f32.mrb[23].mxu1  ;;  %v1554_v5 = vrot.slane %v1553_v49, 4  ;;  %v1581_v8 = vrot.slane %v1580_v58, 4  ;;  %1576 = vst [vmem:[#allocation3 + $0x8] sm:$0xf] %v1572_v1  ;;  %v1594_v6 = vsel %vm4757_vm11, %v3582_v59, %v1593_v47 }
 0x368   :  { %v1582_v37 = vrot.slane %v5287_v54, 5  ;;  %v1583_v50 = vrot.slane %v1556_v53, 6  ;;  %v1563_v56 = vor.u32 %v1562_v20, %v1558_v63  ;;  %v1595_v17 = vrot.slane %v1593_v47, 4  ;;  %1598 = vst [vmem:[#allocation3 + $0x10] sm:$0xf] %v1594_v6 }
 0x369   :  { %1577 = vst [vmem:[#allocation3 + $0x1c] sm:$0x1] %v1573_v36  ;;  %v1559_v7 = vsel %vm4705_vm5, %v1554_v5, %v1558_v63  ;;  %v3840_v33 = vpack.c.bf16 %v1534_v60, %v1534_v60  ;;  %v1535_v12 = vmax.f32 %v1527_v62, %v1529_v43  ;;  %v3587_v14 = vrot.slane %v5287_v54, 10  ;;  %v4351_v54 = vld [vmem:[%s5791_s5 + $0x114] ss:$8 sps:$4 sm:$0xff]  }
 0x36a   :  { %v1584_v9 = vor.u32 %v1583_v50, %v1582_v37  ;;  %v1564_v13 = vrot.slane %v1563_v56, 4  ;;  %1567 = vst [vmem:[#allocation3 + $0x4] sm:$0xf] %v1559_v7  ;;  %1599 = vst [vmem:[#allocation3 + $0x24] sm:$0x1] %v1595_v17  ;;  %vm2400_vm4 = vcmask 162816  }
 0x36b   :  { %v1608_v4 = vrot.slane %v3840_v33, 6  ;;  %v1625_v21 = vshrl.u32 %v3840_v33, 16  ;;  %1679 = vst [vmem:[#allocation3 + $0x24] sm:$0xe] %v3840_v33  ;;  %v1628_v24 = vshll.u32 %v3840_v33, 16  ;;  %v1649_v39 = vrot.slane %v3840_v33, 7 }
 0x36c   :  { %v1585_v18 = vsel %vm4733_vm10, %v1581_v8, %v1584_v9  ;;  %v1586_v19 = vrot.slane %v1584_v9, 4  ;;  %1568 = vst [vmem:[#allocation3 + $0x18] sm:$0x1] %v1564_v13  ;;  %v3841_v25 = vpack.c.bf16 %v1535_v12, %v1535_v12  ;;  %v4354_v47 = vld [vmem:[%s5791_s5 + $0x124] ss:$8 sps:$4 sm:$0xff]   ;;  %vm2469_vm5 = vcmask 1045504  }
 0x36d   :  { %1589 = vst [vmem:[#allocation3 + $0xc] sm:$0xf] %v1585_v18  ;;  %v1609_v26 = vsel %vm4757_vm11, %v3585_v16, %v1608_v4  ;;  %v1610_v27 = vrot.slane %v1608_v4, 4  ;;  %v1627_v28 = vrot.slane %v1625_v21, 6  ;;  %v1660_v29 = vrot.slane %v1625_v21, 7 }
 0x36e   :  { %1590 = vst [vmem:[#allocation3 + $0x20] sm:$0x1] %v1586_v19  ;;  %1613 = vst [vmem:[#allocation3 + $0x14] sm:$0xe] %v1609_v26  ;;  %v1630_v15 = vrot.slane %v1628_v24, 7  ;;  %v1650_v61 = vrot.slane %v1649_v39, 4 }
 0x36f   :  { %1655 = vst [vmem:[#allocation3 + $0x1c] sm:$0xe] %v1649_v39  ;;  %v1635_v34 = vshll.u32 %v3841_v25, 16  ;;  %v1651_v35 = vrot.slane %v3841_v25, 7  ;;  %1680 = vst [vmem:[#allocation3 + $0x38] sm:$0x3] %v3841_v25  ;;  %v1663_v38 = vor.u32 %v1660_v29, %v1628_v24 }
 0x370   :  { %1614 = vst [vmem:[#allocation3 + $0x28] sm:$0x3] %v1610_v27  ;;  %v1666_v2 = vshrl.u32 %v3841_v25, 16  ;;  %v1631_v40 = vor.u32 %v1630_v15, %v1627_v28  ;;  %v1664_v46 = vrot.slane %v1660_v29, 4  ;;  %v4361_v58 = vld [vmem:[%s5791_s5 + $0x134] ss:$8 sps:$4 sm:$0xff]  }
 0x371   :  { %v1652_v11 = vsel %vm4891_vm3, %v1650_v61, %v1651_v35  ;;  %1675 = vst [vmem:[#allocation3 + $0x20] sm:$0xe] %v1663_v38  ;;  %v1637_v45 = vrot.slane %v1635_v34, 7  ;;  %v4359_v60 = vld [vmem:[%s5791_s5 + $0x130] ss:$8 sps:$4 sm:$0xff]   ;;  %vm2606_vm10 = vcmask 261120  }
 0x372   :  { %1656 = vst [vmem:[#allocation3 + $0x30] sm:$0x3] %v1652_v11  ;;  %v1668_v41 = vrot.slane %v1666_v2, 7  ;;  %v1632_v42 = vsel %vm4845_vm14, %v3587_v14, %v1631_v40  ;;  %v1633_v44 = vrot.slane %v1631_v40, 4  ;;  %v4364_v62 = vld [vmem:[%s5791_s5 + $0x144] ss:$8 sps:$4 sm:$0xff]  }
 0x373   :  { %1641 = vst [vmem:[#allocation3 + $0x18] sm:$0xe] %v1632_v42  ;;  %v4362_v63 = vld [vmem:[%s5791_s5 + $0x140] ss:$8 sps:$4 sm:$0xff]   ;;  %v4367_v20 = vld [vmem:[%s5791_s5 + $0x154] ss:$8 sps:$4 sm:$0xff]  }
 0x374   :  { %v1671_v48 = vor.u32 %v1668_v41, %v1635_v34  ;;  %v1638_v51 = vsel %vm4845_vm14, %v1633_v44, %v1637_v45  ;;  %v4365_v1 = vld [vmem:[%s5791_s5 + $0x150] ss:$8 sps:$4 sm:$0xff]   ;;  %v4370_v36 = vld [vmem:[%s5791_s5 + $0x164] ss:$8 sps:$4 sm:$0xff]   ;;  %v4368_v43 = vld [vmem:[%s5791_s5 + $0x160] ss:$8 sps:$4 sm:$0xff]  }
 0x375   :  { %1642 = vst [vmem:[#allocation3 + $0x2c] sm:$0x3] %v1638_v51  ;;  %v4342_v23 = vld [vmem:[#allocation3] ss:$20 sps:$4 sm:$0xff]   ;;  %v4373_v5 = vld [vmem:[%s5791_s5 + $0x174] ss:$8 sps:$4 sm:$0xff]  }
 0x376   :  { %v1672_v10 = vsel %vm4906_vm6, %v1664_v46, %v1671_v48  ;;  %v4371_v8 = vld [vmem:[%s5791_s5 + $0x170] ss:$8 sps:$4 sm:$0xff]   ;;  %v4376_v37 = vld [vmem:[%s5791_s5 + $0x184] ss:$8 sps:$4 sm:$0xff]   ;;  %v4374_v50 = vld [vmem:[%s5791_s5 + $0x180] ss:$8 sps:$4 sm:$0xff]  }
 0x377   :  { %1676 = vst [vmem:[#allocation3 + $0x34] sm:$0x3] %v1672_v10  ;;  %v4379_v56 = vld [vmem:[%s5791_s5 + $0x194] ss:$8 sps:$4 sm:$0xff]   ;;  %v4377_v6 = vld [vmem:[%s5791_s5 + $0x190] ss:$8 sps:$4 sm:$0xff]  }
 0x378   :  { %v4358_v59 = vld [vmem:[#allocation3 + $0xc] ss:$20 sps:$4 sm:$0xff]   ;;  %v4380_v7 = vld [vmem:[%s5791_s5 + $0x1a0] ss:$8 sps:$4 sm:$0xff]   ;;  %v4385_v9 = vld [vmem:[%s5791_s5 + $0x1b4] ss:$8 sps:$4 sm:$0xff]  }
 0x379   :  { %v4382_v17 = vld [vmem:[%s5791_s5 + $0x1a4] ss:$8 sps:$4 sm:$0xff]   ;;  %v4383_v33 = vld [vmem:[%s5791_s5 + $0x1b0] ss:$8 sps:$4 sm:$0xff]   ;;  %v4386_v13 = vld [vmem:[%s5791_s5 + $0x1c0] ss:$8 sps:$4 sm:$0xff]  }
 0x37a   :  { %v4344_v53 = vld [vmem:[#allocation3 + $0x4] ss:$20 sps:$4 sm:$0xff]   ;;  %v4391_v16 = vld [vmem:[%s5791_s5 + $0x1d4] ss:$8 sps:$4 sm:$0xff]   ;;  %v4392_v4 = vld [vmem:[%s5791_s5 + $0x1e0] ss:$8 sps:$4 sm:$0xff]  }
 0x37b   :  { %2258 = vmatprep.mubr.bf16.mxu1 %v4344_v53  ;;  %v4388_v12 = vld [vmem:[%s5791_s5 + $0x1c4] ss:$8 sps:$4 sm:$0xff]   ;;  %v4389_v18 = vld [vmem:[%s5791_s5 + $0x1d0] ss:$8 sps:$4 sm:$0xff]   ;;  %v4397_v21 = vld [vmem:[%s5791_s5 + $0x1f4] ss:$8 sps:$4 sm:$0xff]  }
 0x37c   :  { %v1687_v55 = vld [vmem:[#allocation3 + $0x28] sm:$0x33]  ;;  %2259 = vmatmul.mubr.bf16.vlgmr.msra.gmra.mrb[24].mxu1 %v4342_v23  ;;  %v4394_v19 = vld [vmem:[%s5791_s5 + $0x1e4] ss:$8 sps:$4 sm:$0xff]   ;;  %v4398_v26 = vld [vmem:[%s5791_s5 + $0x200] ss:$8 sps:$4 sm:$0xff]  }
 0x37d   :  { %v3596_v0 = vcombine.high %v1687_v55, %v1687_v55  ;;  %2278 = vmatpush1.bf16.msra.mxu1 %v4345_v22  ;;  %v3595_v49 = vcombine.low %v1687_v55, %v1687_v55  ;;  %v4395_v24 = vld [vmem:[%s5791_s5 + $0x1f0] ss:$8 sps:$4 sm:$0xff]   ;;  %v4400_v39 = vld [vmem:[%s5791_s5 + $0x204] ss:$8 sps:$4 sm:$0xff]   ;;  %v4356_v27 = vld [vmem:[#allocation3 + $0x8] ss:$20 sps:$4 sm:$0xff]  }
 0x37e   :  { %2279 = vmatprep.subr.bf16.mxu1 %v4351_v54  ;;  %v1688_v25 = vld [vmem:[#allocation3 + $0x30] sm:$0x33]  ;;  %v4402_v15 = vld [vmem:[%s5791_s5 + $0x210] ss:$8 sps:$4 sm:$0xff]   ;;  %v4408_v61 = vld [vmem:[%s5791_s5 + $0x224] ss:$8 sps:$4 sm:$0xff]  }
 0x37f   :  { %2268 = vmatprep.mubr.bf16.mxu1 %v3596_v0  ;;  %v4404_v28 = vld [vmem:[%s5791_s5 + $0x214] ss:$8 sps:$4 sm:$0xff]   ;;  %v3598_v29 = vcombine.high %v1688_v25, %v1688_v25  ;;  %v4406_v34 = vld [vmem:[%s5791_s5 + $0x220] ss:$8 sps:$4 sm:$0xff]   ;;  %v3597_v35 = vcombine.low %v1688_v25, %v1688_v25  ;;  %v4409_v2 = vld [vmem:[%s5791_s5 + $0x230] ss:$8 sps:$4 sm:$0xff]  }
 0x380   :  { %v4411_v38 = vld [vmem:[%s5791_s5 + $0x234] ss:$8 sps:$4 sm:$0xff]   ;;  %v4414_v14 = vld [vmem:[%s5791_s5 + $0x244] ss:$8 sps:$4 sm:$0xff]   ;;  %v4412_v40 = vld [vmem:[%s5791_s5 + $0x240] ss:$8 sps:$4 sm:$0xff]  }
 0x381   :  { %2280 = vmatpush1.bf16.msra.mxu1 %v4349_v52  ;;  %v4417_v11 = vld [vmem:[%s5791_s5 + $0x254] ss:$8 sps:$4 sm:$0xff]   ;;  %v4415_v41 = vld [vmem:[%s5791_s5 + $0x250] ss:$8 sps:$4 sm:$0xff]   ;;  %v4420_v42 = vld [vmem:[%s5791_s5 + $0x264] ss:$8 sps:$4 sm:$0xff]  }
 0x382   :  { %2281 = vmatprep.subr.bf16.mxu1 %v4354_v47  ;;  %v4418_v44 = vld [vmem:[%s5791_s5 + $0x260] ss:$8 sps:$4 sm:$0xff]   ;;  %v4423_v45 = vld [vmem:[%s5791_s5 + $0x274] ss:$8 sps:$4 sm:$0xff]   ;;  %v4421_v46 = vld [vmem:[%s5791_s5 + $0x270] ss:$8 sps:$4 sm:$0xff]  }
 0x383   :  { %v4424_v48 = vld [vmem:[#allocation3 + $0x10] ss:$20 sps:$4 sm:$0xff]   ;;  %v4425_v51 = vld [vmem:[#allocation3 + $0x38] ss:$0 sps:$4 sm:$0x33]   ;;  %vm4538_vm11 = vmmov 0  }
 0x384   :  { %2269 = vmatmul.mubr.bf16.gmra.mrb[28].mxu1 %v3595_v49  ;;  %v1770_v10 = vld [vmem:[%s5792_s6] sm:$0x3]  ;;  %vm3368_vm14 = vcmask 687104  }
 0x385   :  { %2282 = vmatpush1.bf16.msra.mxu1 %v4352_v57  ;;  %2309 = vmatprep.mubr.bf16.mxu1 %v4358_v59  ;;  %v1775_v22 = vrot.slane %v1770_v10, %v443_v31  ;;  %v1779_v23 = vrot.slane %v1770_v10, %v447_v32  ;;  %v4446_v25 = vld [vmem:[%s5794_s8 + $0x60] ss:$8 sps:$4 sm:$0xff]  }
 0x386   :  { %2283 = vmatprep.subr.bf16.mxu1 %v4361_v58 }
 0x389   :  { %2284 = vmatpush1.bf16.msra.mxu1 %v4359_v60 }
 0x38a   :  { %2285 = vmatprep.subr.bf16.mxu1 %v4364_v62 }
 0x38d   :  { %2286 = vmatpush1.bf16.msra.mxu1 %v4362_v63 }
 0x38e   :  { %2287 = vmatprep.subr.bf16.mxu1 %v4367_v20 }
 0x391   :  { %2288 = vmatpush1.bf16.msra.mxu1 %v4365_v1 }
 0x392   :  { %2289 = vmatprep.subr.bf16.mxu1 %v4370_v36 }
 0x395   :  { %2290 = vmatpush1.bf16.msra.mxu1 %v4368_v43 }
 0x396   :  { %2291 = vmatprep.subr.bf16.mxu1 %v4373_v5 }
 0x399   :  { %2292 = vmatpush1.bf16.msra.mxu1 %v4371_v8 }
 0x39a   :  { %2293 = vmatprep.subr.bf16.mxu1 %v4376_v37 }
 0x39d   :  { %2294 = vmatpush1.bf16.msra.mxu1 %v4374_v50 }
 0x39e   :  { %2295 = vmatprep.subr.bf16.mxu1 %v4379_v56  ;;  %v4430_v56 = vld [vmem:[%s5794_s8 + $0x4] ss:$8 sps:$4 sm:$0xff]  }
 0x3a1   :  { %2296 = vmatpush1.bf16.msra.mxu1 %v4377_v6 }
 0x3a2   :  { %2297 = vmatprep.subr.bf16.mxu1 %v4382_v17  ;;  %v4426_v17 = vld [vmem:[%s5793_s7] sm:$0xff]  }
 0x3a5   :  { %2298 = vmatpush1.bf16.msra.mxu1 %v4380_v7  ;;  %v4428_v7 = vld [vmem:[%s5794_s8] ss:$8 sps:$4 sm:$0xff]  }
 0x3a6   :  { %2299 = vmatprep.subr.bf16.mxu1 %v4385_v9  ;;  %v4433_v9 = vld [vmem:[%s5794_s8 + $0x14] ss:$8 sps:$4 sm:$0xff]  }
 0x3a9   :  { %2300 = vmatpush1.bf16.msra.mxu1 %v4383_v33  ;;  %v4431_v33 = vld [vmem:[%s5794_s8 + $0x10] ss:$8 sps:$4 sm:$0xff]  }
 0x3aa   :  { %2301 = vmatprep.subr.bf16.mxu1 %v4388_v12  ;;  %v4436_v12 = vld [vmem:[%s5794_s8 + $0x24] ss:$8 sps:$4 sm:$0xff]  }
 0x3ad   :  { %2302 = vmatpush1.bf16.msra.mxu1 %v4386_v13  ;;  %v4427_v13 = vld [vmem:[%s5793_s7 + $0x8] ss:$0 sps:$4 sm:$0x33]  }
 0x3ae   :  { %2303 = vmatprep.subr.bf16.mxu1 %v4391_v16  ;;  %v4434_v16 = vld [vmem:[%s5794_s8 + $0x20] ss:$8 sps:$4 sm:$0xff]  }
 0x3b1   :  { %2304 = vmatpush1.bf16.msra.mxu1 %v4389_v18  ;;  %v4437_v18 = vld [vmem:[%s5794_s8 + $0x30] ss:$8 sps:$4 sm:$0xff]  }
 0x3b2   :  { %2305 = vmatprep.subr.bf16.mxu1 %v4394_v19  ;;  %v4442_v19 = vld [vmem:[%s5794_s8 + $0x44] ss:$8 sps:$4 sm:$0xff]  }
 0x3b5   :  { %2306 = vmatpush1.bf16.msra.mxu1 %v4392_v4  ;;  %v4440_v4 = vld [vmem:[%s5794_s8 + $0x40] ss:$8 sps:$4 sm:$0xff]  }
 0x3b6   :  { %2307 = vmatprep.subr.bf16.mxu1 %v4397_v21  ;;  %v4445_v21 = vld [vmem:[%s5794_s8 + $0x54] ss:$8 sps:$4 sm:$0xff]  }
 0x3b9   :  { %2308 = vmatpush1.bf16.msra.mxu1 %v4395_v24  ;;  %v4443_v24 = vld [vmem:[%s5794_s8 + $0x50] ss:$8 sps:$4 sm:$0xff]  }
 0x3ba   :  { %2328 = vmatprep.subr.bf16.mxu1 %v4400_v39  ;;  %v4448_v39 = vld [vmem:[%s5794_s8 + $0x64] ss:$8 sps:$4 sm:$0xff]  }
 0x3bc   :  { %2310 = vmatmul.mubr.bf16.vlgmr.msra.gmra.mrb[24].mxu1 %v4356_v27  ;;  %v4451_v27 = vld [vmem:[%s5794_s8 + $0x74] ss:$8 sps:$4 sm:$0xff]  }
 0x3bd   :  { %2319 = vmatprep.mubr.bf16.mxu1 %v3598_v29  ;;  %2329 = vmatpush1.bf16.msra.mxu1 %v4398_v26  ;;  %v4449_v26 = vld [vmem:[%s5794_s8 + $0x70] ss:$8 sps:$4 sm:$0xff]   ;;  %v4452_v29 = vld [vmem:[%s5794_s8 + $0x80] ss:$8 sps:$4 sm:$0xff]  }
 0x3be   :  { %2330 = vmatprep.subr.bf16.mxu1 %v4404_v28  ;;  %v4454_v28 = vld [vmem:[%s5794_s8 + $0x84] ss:$8 sps:$4 sm:$0xff]  }
 0x3c1   :  { %2331 = vmatpush1.bf16.msra.mxu1 %v4402_v15  ;;  %v4457_v15 = vld [vmem:[%s5794_s8 + $0x94] ss:$8 sps:$4 sm:$0xff]  }
 0x3c2   :  { %2332 = vmatprep.subr.bf16.mxu1 %v4408_v61  ;;  %v4455_v61 = vld [vmem:[%s5794_s8 + $0x90] ss:$8 sps:$4 sm:$0xff]  }
 0x3c4   :  { %2320 = vmatmul.mubr.bf16.gmra.mrb[28].mxu1 %v3597_v35  ;;  %v4459_v35 = vld [vmem:[%s5795_s9 + $0x40] sm:$0xff]  }
 0x3c5   :  { %2333 = vmatpush1.bf16.msra.mxu1 %v4406_v34  ;;  %2360 = vmatprep.mubr.bf16.mxu1 %v4536_v3  ;;  %v4537_v34 = vmov 0.0  }
 0x3c6   :  { %2334 = vmatprep.subr.bf16.mxu1 %v4411_v38  ;;  %v4461_v38 = vld [vmem:[%s5795_s9 + $0x48] sm:$0xff]  }
 0x3c9   :  { %2335 = vmatpush1.bf16.msra.mxu1 %v4409_v2  ;;  %v4463_v2 = vld [vmem:[%s5795_s9 + $0x50] sm:$0xff]  }
 0x3ca   :  { %2336 = vmatprep.subr.bf16.mxu1 %v4414_v14  ;;  %v4465_v14 = vld [vmem:[%s5795_s9 + $0x58] sm:$0xff]  }
 0x3cd   :  { %2337 = vmatpush1.bf16.msra.mxu1 %v4412_v40  ;;  %v4467_v40 = vld [vmem:[%s5795_s9 + $0x60] sm:$0xff]  }
 0x3ce   :  { %2338 = vmatprep.subr.bf16.mxu1 %v4417_v11  ;;  %v4469_v11 = vld [vmem:[%s5795_s9 + $0x68] sm:$0xff]  }
 0x3d1   :  { %2339 = vmatpush1.bf16.msra.mxu1 %v4415_v41 }
 0x3d2   :  { %2340 = vmatprep.subr.bf16.mxu1 %v4420_v42 }
 0x3d5   :  { %2341 = vmatpush1.bf16.msra.mxu1 %v4418_v44 }
 0x3d6   :  { %2342 = vmatprep.subr.bf16.mxu1 %v4423_v45 }
 0x3d9   :  { %2343 = vmatpush1.bf16.msra.mxu1 %v4421_v46 }
 0x3da   :  { %3905 = vmatprep.subr.bf16.mxu1 %v4537_v34 }
 0x3dc   :  { %2361 = vmatmul.mubr.bf16.vlgmr.msra.gmra.mrb[24].mxu1 %v4424_v48 }
 0x3dd   :  { %2370 = vmatprep.mubr.bf16.mxu1 %v4536_v3  ;;  %3906 = vmatpush3.bf16.msra.mxu1 %v4459_v35  ;;  %v4491_v35 = vld [vmem:[%s5795_s9 + $0x108] sm:$0xff]  }
 0x3de   :  { %3907 = vmatprep.subr.bf16.mxu1 %v4537_v34 }
 0x3e1   :  { %3908 = vmatpush3.bf16.msra.mxu1 %v4461_v38  ;;  %v4492_v38 = vld [vmem:[%s5795_s9 + $0x110] sm:$0xff]  }
 0x3e2   :  { %3909 = vmatprep.subr.bf16.mxu1 %v4537_v34 }
 0x3e4   :  { %2371 = vmatmul.mubr.bf16.gmra.mrb[28].mxu1 %v4425_v51 }
 0x3e5   :  { %3910 = vmatpush3.bf16.msra.mxu1 %v4463_v2  ;;  %3921 = vmatprep.mubr.msk.bf16.mxu1 %vm4538_vm11, %v4537_v34  ;;  %v4493_v2 = vld [vmem:[%s5795_s9 + $0x118] sm:$0xff]  }
 0x3e6   :  { %3911 = vmatprep.subr.bf16.mxu1 %v4537_v34 }
 0x3e9   :  { %3912 = vmatpush3.bf16.msra.mxu1 %v4465_v14  ;;  %v4494_v14 = vld [vmem:[%s5795_s9 + $0x120] sm:$0xff]  }
 0x3ea   :  { %3913 = vmatprep.subr.bf16.mxu1 %v4537_v34 }
 0x3ed   :  { %3914 = vmatpush3.bf16.msra.mxu1 %v4467_v40  ;;  %v4495_v40 = vld [vmem:[%s5795_s9 + $0x128] sm:$0xff]  }
 0x3ee   :  { %3915 = vmatprep.subr.bf16.mxu1 %v4537_v34 }
 0x3f1   :  { %3916 = vmatpush3.bf16.msra.mxu1 %v4469_v11  ;;  %v4496_v11 = vld [vmem:[%s5795_s9 + $0x130] sm:$0xff]  }
 0x3f2   :  { %3917 = vmatprep.subr.bf16.mxu1 %v4537_v34 }
 0x4af   :  { %v2362_v53 = vpop.f32.mrb[24].mxu1 }
 0x4b0   :  { %v4055_v54 = vadd.f32 %v2362_v53, %v1775_v22  ;;  %v2364_v55 = vpop.f32.mrb[25].mxu1 }
 0x4b1   :  { %v4056_v0 = vadd.f32 %v2364_v55, %v1779_v23  ;;  %v2366_v52 = vpop.f32.mrb[26].mxu1 }
 0x4b2   :  { %v4057_v47 = vadd.f32 %v2366_v52, %v1775_v22  ;;  %v2368_v57 = vpop.f32.mrb[27].mxu1  ;;  %v2379_v58 = vmax.f32 %v4055_v54, 0.0 }
 0x4b3   :  { %v4058_v49 = vadd.f32 %v2368_v57, %v1779_v23  ;;  %v2380_v60 = vmax.f32 %v4056_v0, 0.0 }
 0x4b4   :  { %v2381_v59 = vmax.f32 %v4057_v47, 0.0 }
 0x4b5   :  { %v2382_v62 = vmax.f32 %v4058_v49, 0.0 }
 0x4b6   :  { %v2388_v63 = vpack.c.bf16 %v2381_v59, %v2379_v58 }
 0x4b7   :  { %v2389_v20 = vpack.c.bf16 %v2382_v62, %v2380_v60  ;;  %v2372_v1 = vpop.f32.mrb[28].mxu1  ;;  %v4458_v60 = vld [vmem:[%s5795_s9] sm:$0xff]   ;;  %v4460_v62 = vld [vmem:[%s5795_s9 + $0x8] sm:$0xff]  }
 0x4b8   :  { %v4059_v36 = vadd.f32 %v2372_v1, %v1775_v22  ;;  %v2374_v31 = vpop.f32.mrb[29].mxu1  ;;  %v4466_v1 = vld [vmem:[%s5795_s9 + $0x20] sm:$0xff]  }
 0x4b9   :  { %v4060_v43 = vadd.f32 %v2374_v31, %v1779_v23  ;;  %v2376_v30 = vpop.f32.mrb[30].mxu1  ;;  %2414 = vmatprep.subr.bf16.mxu0 %v2389_v20  ;;  %v4464_v20 = vld [vmem:[%s5795_s9 + $0x18] sm:$0xff]   ;;  %v4470_v31 = vld [vmem:[%s5795_s9 + $0x30] sm:$0xff]  }
 0x4ba   :  { %v2383_v32 = vmax.f32 %v4059_v36, 0.0  ;;  %v2377_v5 = vpop.f32.mrb[31].mxu1  ;;  %2415 = vmatpush1.bf16.msra.mxu0 %v2388_v63  ;;  %v4462_v63 = vld [vmem:[%s5795_s9 + $0x10] sm:$0xff]   ;;  %v4468_v36 = vld [vmem:[%s5795_s9 + $0x28] sm:$0xff]   ;;  %v4472_v30 = vld [vmem:[%s5795_s9 + $0x38] sm:$0xff]  }
 0x4bb   :  { %v2384_v8 = vmax.f32 %v4060_v43, 0.0  ;;  %v4471_v43 = vld [vmem:[%s5795_s9 + $0x70] sm:$0xff]  }
 0x4bc   :  { %v2390_v37 = vpack.c.bf16 %v2383_v32, %v2383_v32  ;;  %3918 = vmatpush3.bf16.msra.mxu1 %v4471_v43  ;;  %v4473_v32 = vld [vmem:[%s5795_s9 + $0x78] sm:$0xff]  }
 0x4bd   :  { %v2391_v50 = vpack.c.bf16 %v2384_v8, %v2384_v8  ;;  %3919 = vmatprep.subr.bf16.mxu1 %v4537_v34 }
 0x4be   :  { %v2409_v6 = vsel %vm178_vm8, %v2390_v37, 0 }
 0x4bf   :  { %3682 = vmatprep.subr.msk.bf16.mxu0 %vm178_vm8, %v2391_v50 }
 0x4c0   :  { %2417 = vmatpush1.bf16.msra.mxu0 %v2409_v6  ;;  %3920 = vmatpush3.bf16.msra.mxu1 %v4473_v32 }
 0x4c1   :  { %2610 = vmatprep.subr.bf16.mxu0 %v4430_v56  ;;  %3945 = vmatprep.subr.bf16.mxu1 %v4537_v34  ;;  %v4474_v56 = vld [vmem:[%s5795_s9 + $0xc0] sm:$0xff]  }
 0x4c3   :  { %3683 = vmatmul.mubr.msk.bf16.vlgmr.msra.gmra.mrb[16].mxu0 %vm2400_vm4, %v4426_v17 }
 0x4c4   :  { %2456 = vmatprep.mubr.bf16.mxu0 %v4536_v3  ;;  %2611 = vmatpush1.bf16.msra.mxu0 %v4428_v7  ;;  %v4439_v3 = vld [vmem:[%s5794_s8 + $0x34] ss:$8 sps:$4 sm:$0xff]  }
 0x4c5   :  { %2612 = vmatprep.subr.bf16.mxu0 %v4433_v9  ;;  %v4475_v9 = vld [vmem:[%s5795_s9 + $0x80] sm:$0xff]  }
 0x4c8   :  { %2613 = vmatpush1.bf16.msra.mxu0 %v4431_v33 }
 0x4c9   :  { %2614 = vmatprep.subr.bf16.mxu0 %v4436_v12  ;;  %v4476_v12 = vld [vmem:[%s5795_s9 + $0xc8] sm:$0xff]  }
 0x4cb   :  { %3684 = vmatmul.mubr.msk.bf16.gmra.mrb[20].mxu0 %vm2400_vm4, %v4427_v13  ;;  %v4477_v13 = vld [vmem:[%s5795_s9 + $0x88] sm:$0xff]  }
 0x4cc   :  { %2615 = vmatpush1.bf16.msra.mxu0 %v4434_v16  ;;  %v4478_v16 = vld [vmem:[%s5795_s9 + $0xd0] sm:$0xff]  }
 0x4cd   :  { %2616 = vmatprep.subr.bf16.mxu0 %v4439_v3  ;;  %v4479_v3 = vld [vmem:[%s5795_s9 + $0x90] sm:$0xff]  }
 0x4d0   :  { %2617 = vmatpush1.bf16.msra.mxu0 %v4437_v18  ;;  %v4480_v18 = vld [vmem:[%s5795_s9 + $0xd8] sm:$0xff]  }
 0x4d1   :  { %2618 = vmatprep.subr.bf16.mxu0 %v4442_v19  ;;  %v4481_v19 = vld [vmem:[%s5795_s9 + $0x98] sm:$0xff]  }
 0x4d4   :  { %2619 = vmatpush1.bf16.msra.mxu0 %v4440_v4  ;;  %v4482_v4 = vld [vmem:[%s5795_s9 + $0xe0] sm:$0xff]  }
 0x4d5   :  { %2620 = vmatprep.subr.bf16.mxu0 %v4445_v21  ;;  %v4483_v21 = vld [vmem:[%s5795_s9 + $0xa0] sm:$0xff]  }
 0x4d8   :  { %2621 = vmatpush1.bf16.msra.mxu0 %v4443_v24  ;;  %v4484_v24 = vld [vmem:[%s5795_s9 + $0xe8] sm:$0xff]  }
 0x4d9   :  { %2622 = vmatprep.subr.bf16.mxu0 %v4448_v39  ;;  %v4485_v39 = vld [vmem:[%s5795_s9 + $0xa8] sm:$0xff]  }
 0x4dc   :  { %2623 = vmatpush1.bf16.msra.mxu0 %v4446_v25  ;;  %v4486_v25 = vld [vmem:[%s5795_s9 + $0xf0] sm:$0xff]  }
 0x4dd   :  { %2624 = vmatprep.subr.bf16.mxu0 %v4451_v27  ;;  %v4488_v27 = vld [vmem:[%s5795_s9 + $0xf8] sm:$0xff]  }
 0x4e0   :  { %2625 = vmatpush1.bf16.msra.mxu0 %v4449_v26  ;;  %v4487_v26 = vld [vmem:[%s5795_s9 + $0xb0] sm:$0xff]  }
 0x4e1   :  { %2626 = vmatprep.subr.bf16.mxu0 %v4454_v28  ;;  %v4489_v28 = vld [vmem:[%s5795_s9 + $0xb8] sm:$0xff]  }
 0x4e4   :  { %2627 = vmatpush1.bf16.msra.mxu0 %v4452_v29 }
 0x4e5   :  { %2628 = vmatprep.subr.bf16.mxu0 %v4457_v15  ;;  %v4490_v15 = vld [vmem:[%s5795_s9 + $0x100] sm:$0xff]  }
 0x4e8   :  { %2629 = vmatpush1.bf16.msra.mxu0 %v4455_v61 }
 0x4e9   :  { %3925 = vmatprep.subr.bf16.mxu0 %v4537_v34 }
 0x596   :  { %v2448_v41 = vpop.f32.mrb[16].mxu0 }
 0x597   :  { %v2450_v42 = vpop.f32.mrb[17].mxu0 }
 0x598   :  { %v2452_v44 = vpop.f32.mrb[18].mxu0 }
 0x599   :  { %v2454_v45 = vpop.f32.mrb[19].mxu0  ;;  %v2470_v48 = vrot.slane %v2452_v44, 2 }
 0x59a   :  { %v2473_v22 = vrot.slane %v2454_v45, 2 }
 0x59e   :  { %v2458_v46 = vpop.f32.mrb[20].mxu0 }
 0x59f   :  { %v2471_v51 = vrot.slane %v2458_v46, 2  ;;  %v2460_v10 = vpop.f32.mrb[21].mxu0  ;;  %v4500_v46 = vld [vmem:[%s5797_s11 + $0x10] sm:$0xff]  }
 0x5a0   :  { %v2474_v23 = vrot.slane %v2460_v10, 2  ;;  %v2462_v53 = vpop.f32.mrb[22].mxu0  ;;  %v4503_v10 = vld [vmem:[%s5797_s11 + $0x28] sm:$0xff]  }
 0x5a1   :  { %v2472_v54 = vsel %vm2469_vm5, %v2470_v48, %v2471_v51  ;;  %v2482_v55 = vmax.f32 %v2452_v44, %v2471_v51  ;;  %v2463_v0 = vpop.f32.mrb[23].mxu0  ;;  %v4498_v44 = vld [vmem:[%s5797_s11] sm:$0xff]   ;;  %v4501_v48 = vld [vmem:[%s5797_s11 + $0x18] sm:$0xff]  }
 0x5a2   :  { %v2480_v52 = vmax.f32 %v2448_v41, %v2472_v54  ;;  %v2475_v47 = vsel %vm2469_vm5, %v2473_v22, %v2474_v23  ;;  %v2483_v57 = vmax.f32 %v2454_v45, %v2474_v23  ;;  %v4497_v41 = vld [vmem:[%s5795_s9 + $0x138] sm:$0xff]   ;;  %v4499_v45 = vld [vmem:[%s5797_s11 + $0x8] sm:$0xff]   ;;  %v4502_v51 = vld [vmem:[%s5797_s11 + $0x20] sm:$0xff]  }
 0x5a3   :  { %v2481_v49 = vmax.f32 %v2450_v42, %v2475_v47  ;;  %v4504_v22 = vld [vmem:[%s5797_s11 + $0x30] sm:$0xff]   ;;  %v4505_v23 = vld [vmem:[%s5797_s11 + $0x38] ss:$0 sps:$4 sm:$0xff]   ;;  %v4506_v54 = vld [vmem:[%s5799_s13] sm:$0xff]  }
 0x5a4   :  { %v2504_v58 = vpack.c.bf16 %v2482_v55, %v2480_v52  ;;  %v3273_v53 = vsel %vm1220_vm7, %v4505_v23, 0  ;;  %v4507_v55 = vld [vmem:[%s5799_s13 + $0x8] sm:$0xff]   ;;  %v4508_v0 = vld [vmem:[%s5799_s13 + $0x10] sm:$0xff]   ;;  %v4509_v52 = vld [vmem:[%s5799_s13 + $0x18] sm:$0xff]  }
 0x5a5   :  { %v2505_v59 = vpack.c.bf16 %v2483_v57, %v2481_v49 }
 0x5a7   :  { %3705 = vmatprep.mubr.msk.bf16.mxu0 %vm2606_vm10, %v2505_v59 }
 0x5a8   :  { %2643 = vmatmul.mubr.bf16.vlgmr.msra.gmra.mrb[24].mxu0 %v2504_v58 }
 0x5a9   :  { %3926 = vmatpush3.bf16.msra.mxu0 %v4458_v60  ;;  %3941 = vmatprep.mubr.msk.bf16.mxu0 %vm4538_vm11, %v4537_v34 }
 0x5aa   :  { %3927 = vmatprep.subr.bf16.mxu0 %v4537_v34 }
 0x5ad   :  { %3928 = vmatpush3.bf16.msra.mxu0 %v4460_v62 }
 0x5ae   :  { %3929 = vmatprep.subr.bf16.mxu0 %v4537_v34 }
 0x5b1   :  { %3930 = vmatpush3.bf16.msra.mxu0 %v4462_v63 }
 0x5b2   :  { %3931 = vmatprep.subr.bf16.mxu0 %v4537_v34 }
 0x5b5   :  { %3932 = vmatpush3.bf16.msra.mxu0 %v4464_v20 }
 0x5b6   :  { %3933 = vmatprep.subr.bf16.mxu0 %v4537_v34 }
 0x5b9   :  { %3934 = vmatpush3.bf16.msra.mxu0 %v4466_v1 }
 0x5ba   :  { %3935 = vmatprep.subr.bf16.mxu0 %v4537_v34 }
 0x5bd   :  { %3936 = vmatpush3.bf16.msra.mxu0 %v4468_v36 }
 0x5be   :  { %3937 = vmatprep.subr.bf16.mxu0 %v4537_v34 }
 0x5c1   :  { %3938 = vmatpush3.bf16.msra.mxu0 %v4470_v31 }
 0x5c2   :  { %3939 = vmatprep.subr.bf16.mxu0 %v4537_v34 }
 0x5c5   :  { %3940 = vmatpush3.bf16.msra.mxu0 %v4472_v30 }
 0x5c6   :  { %3965 = vmatprep.subr.bf16.mxu0 %v4537_v34 }
 0x67b   :  { %v2644_v5 = vpop.f32.mrb[24].mxu0 }
 0x67c   :  { %v2646_v8 = vpop.f32.mrb[25].mxu0 }
 0x67d   :  { %v2653_v37 = vmax.f32 %v2644_v5, %v2646_v8  ;;  %v2648_v50 = vpop.f32.mrb[26].mxu0 }
 0x67e   :  { %v2650_v6 = vpop.f32.mrb[27].mxu0 }
 0x67f   :  { %v2671_v17 = vpack.c.bf16 %v2653_v37, %v2653_v37  ;;  %v5602_v7 = vmax.f32 %v2648_v50, %v2650_v6  ;;  %v3810_v6 = vld [vmem:[%s5796_s10] ss:$0 sm:$0xff] }
 0x681   :  { %v2690_v33 = vrot.slane %v2671_v17, 1  ;;  %3942 = vmatmul.mubr.bf16.vlgmr.msra.gmra.mrb[28].mxu0 %v2671_v17  ;;  %v2993_v29 = vrot.slane %v2671_v17, 3  ;;  %v2885_v61 = vrot.slane %v2671_v17, 2  ;;  %v3101_v42 = vpack.c.bf16 %v5602_v7, %v5602_v7 }
 0x682   :  { %3966 = vmatpush3.bf16.msra.mxu0 %v4474_v56  ;;  %3981 = vmatprep.mubr.msk.bf16.mxu0 %vm4538_vm11, %v4537_v34 }
 0x683   :  { %3922 = vmatmul.mubr.bf16.vlgmr.msra.gmra.mrb[32].mxu1 %v2690_v33  ;;  %3967 = vmatprep.subr.bf16.mxu0 %v4537_v34 }
 0x684   :  { %3946 = vmatpush3.bf16.msra.mxu1 %v4475_v9  ;;  %3961 = vmatprep.mubr.msk.bf16.mxu1 %vm4538_vm11, %v4537_v34 }
 0x685   :  { %3947 = vmatprep.subr.bf16.mxu1 %v4537_v34 }
 0x686   :  { %3968 = vmatpush3.bf16.msra.mxu0 %v4476_v12 }
 0x687   :  { %3969 = vmatprep.subr.bf16.mxu0 %v4537_v34 }
 0x688   :  { %3948 = vmatpush3.bf16.msra.mxu1 %v4477_v13 }
 0x689   :  { %3949 = vmatprep.subr.bf16.mxu1 %v4537_v34 }
 0x68a   :  { %3970 = vmatpush3.bf16.msra.mxu0 %v4478_v16 }
 0x68b   :  { %3971 = vmatprep.subr.bf16.mxu0 %v4537_v34 }
 0x68c   :  { %3950 = vmatpush3.bf16.msra.mxu1 %v4479_v3  ;;  %v4510_v3 = vld [vmem:[%s5799_s13 + $0x20] sm:$0xff]  }
 0x68d   :  { %3951 = vmatprep.subr.bf16.mxu1 %v4537_v34 }
 0x68e   :  { %3972 = vmatpush3.bf16.msra.mxu0 %v4480_v18  ;;  %v4511_v18 = vld [vmem:[%s5799_s13 + $0x28] ss:$0 sps:$4 sm:$0x33]   ;;  %s4539_s13 = smov [#allocation4]  }
 0x68f   :  { %3973 = vmatprep.subr.bf16.mxu0 %v4537_v34  ;;  %s3423_s26 = sshll.u32 %s4539_s13, 4  ;;  %s3424_s26 = int_to_ptr.vmem [resolvable:$true] %s3423_s26 }
 0x690   :  { %3952 = vmatpush3.bf16.msra.mxu1 %v4481_v19  ;;  %v3373_v19 = vsel %vm178_vm8, %v4511_v18, 0  ;;  %vm3415_vm8 = vcmask 74752   ;;  %p4517_p1 = scmp.lt.s32.totalorder %s3424_s26, %s3424_s26 }
 0x691   :  { %3953 = vmatprep.subr.bf16.mxu1 %v4537_v34 }
 0x692   :  { %3974 = vmatpush3.bf16.msra.mxu0 %v4482_v4  ;;  %v3811_v4 = vld [vmem:[%s5798_s12] ss:$0 sm:$0xff]  ;;  %s4512_s12 = scalar_lea.vmem %s3424_s26, 32 }
 0x693   :  { %3975 = vmatprep.subr.bf16.mxu0 %v4537_v34  ;;  %p4513_p0 = scmp.ne.s32.totalorder %s3424_s26, %s4512_s12  ;;  %p4518_p2 = scmp.lt.s32.totalorder %s4512_s12, %s4512_s12 }
 0x694   :  { %3954 = vmatpush3.bf16.msra.mxu1 %v4483_v21 }
 0x695   :  { %3955 = vmatprep.subr.bf16.mxu1 %v4537_v34  ;;  %p4519_p3 = por %p4518_p2, %p4517_p1 }
 0x696   :  { %3976 = vmatpush3.bf16.msra.mxu0 %v4484_v24 }
 0x697   :  { %3977 = vmatprep.subr.bf16.mxu0 %v4537_v34  ;;  %p4520_p4 = pnand %p4519_p3, %p4513_p0 }
 0x698   :  { %3956 = vmatpush3.bf16.msra.mxu1 %v4485_v39 }
 0x699   :  { %3957 = vmatprep.subr.bf16.mxu1 %v4537_v34 }
 0x69a   :  { %3978 = vmatpush3.bf16.msra.mxu0 %v4486_v25 }
 0x69b   :  { %3979 = vmatprep.subr.bf16.mxu0 %v4537_v34 }
 0x69c   :  { %3958 = vmatpush3.bf16.msra.mxu1 %v4487_v26 }
 0x69d   :  { %3959 = vmatprep.subr.bf16.mxu1 %v4537_v34 }
 0x69e   :  { %3980 = vmatpush3.bf16.msra.mxu0 %v4488_v27 }
 0x69f   :  { %4005 = vmatprep.subr.bf16.mxu0 %v4537_v34 }
 0x6a0   :  { %3960 = vmatpush3.bf16.msra.mxu1 %v4489_v28 }
 0x6a1   :  { %3982 = vmatmul.mubr.bf16.vlgmr.msra.gmra.mrb[32].mxu0 %v2993_v29  ;;  %3985 = vmatprep.subr.bf16.mxu1 %v4537_v34 }
 0x6a2   :  { %4021 = vmatprep.mubr.msk.bf16.mxu0 %vm4538_vm11, %v4537_v34  ;;  %4006 = vmatpush3.bf16.msra.mxu0 %v4498_v44 }
 0x6a3   :  { %3962 = vmatmul.mubr.bf16.vlgmr.msra.gmra.mrb[36].mxu1 %v2885_v61  ;;  %4007 = vmatprep.subr.bf16.mxu0 %v4537_v34 }
 0x6a4   :  { %3986 = vmatpush3.bf16.msra.mxu1 %v4490_v15  ;;  %4001 = vmatprep.mubr.msk.bf16.mxu1 %vm4538_vm11, %v4537_v34 }
 0x6a5   :  { %3987 = vmatprep.subr.bf16.mxu1 %v4537_v34 }
 0x6a6   :  { %4008 = vmatpush3.bf16.msra.mxu0 %v4499_v45 }
 0x6a7   :  { %4009 = vmatprep.subr.bf16.mxu0 %v4537_v34 }
 0x6a8   :  { %3988 = vmatpush3.bf16.msra.mxu1 %v4491_v35 }
 0x6a9   :  { %3989 = vmatprep.subr.bf16.mxu1 %v4537_v34 }
 0x6aa   :  { %4010 = vmatpush3.bf16.msra.mxu0 %v4500_v46 }
 0x6ab   :  { %4011 = vmatprep.subr.bf16.mxu0 %v4537_v34 }
 0x6ac   :  { %3990 = vmatpush3.bf16.msra.mxu1 %v4492_v38 }
 0x6ad   :  { %3991 = vmatprep.subr.bf16.mxu1 %v4537_v34 }
 0x6ae   :  { %4012 = vmatpush3.bf16.msra.mxu0 %v4501_v48 }
 0x6af   :  { %4013 = vmatprep.subr.bf16.mxu0 %v4537_v34 }
 0x6b0   :  { %3992 = vmatpush3.bf16.msra.mxu1 %v4493_v2 }
 0x6b1   :  { %3993 = vmatprep.subr.bf16.mxu1 %v4537_v34 }
 0x6b2   :  { %4014 = vmatpush3.bf16.msra.mxu0 %v4502_v51 }
 0x6b3   :  { %4015 = vmatprep.subr.bf16.mxu0 %v4537_v34 }
 0x6b4   :  { %3994 = vmatpush3.bf16.msra.mxu1 %v4494_v14 }
 0x6b5   :  { %3995 = vmatprep.subr.bf16.mxu1 %v4537_v34 }
 0x6b6   :  { %4016 = vmatpush3.bf16.msra.mxu0 %v4503_v10 }
 0x6b7   :  { %4017 = vmatprep.subr.bf16.mxu0 %v4537_v34 }
 0x6b8   :  { %3996 = vmatpush3.bf16.msra.mxu1 %v4495_v40 }
 0x6b9   :  { %3997 = vmatprep.subr.bf16.mxu1 %v4537_v34 }
 0x6ba   :  { %4018 = vmatpush3.bf16.msra.mxu0 %v4504_v22 }
 0x6bb   :  { %4019 = vmatprep.subr.bf16.mxu0 %v4537_v34 }
 0x6bc   :  { %3998 = vmatpush3.bf16.msra.mxu1 %v4496_v11 }
 0x6bd   :  { %3999 = vmatprep.subr.bf16.mxu1 %v4537_v34 }
 0x6be   :  { %4020 = vmatpush3.bf16.msra.mxu0 %v3273_v53 }
 0x6c0   :  { %4000 = vmatpush3.bf16.msra.mxu1 %v4497_v41 }
 0x6c1   :  { %4025 = vmatprep.subr.bf16.mxu1 %v4537_v34 }
 0x6c3   :  { %4002 = vmatmul.mubr.bf16.vlgmr.msra.gmra.mrb[40].mxu1 %v3101_v42 }
 0x6c4   :  { %4037 = vmatprep.mubr.msk.bf16.mxu1 %vm4538_vm11, %v4537_v34  ;;  %4026 = vmatpush3.bf16.msra.mxu1 %v4506_v54 }
 0x6c5   :  { %4027 = vmatprep.subr.bf16.mxu1 %v4537_v34 }
 0x6c8   :  { %4028 = vmatpush3.bf16.msra.mxu1 %v4507_v55 }
 0x6c9   :  { %4029 = vmatprep.subr.bf16.mxu1 %v4537_v34 }
 0x6cc   :  { %4030 = vmatpush3.bf16.msra.mxu1 %v4508_v0 }
 0x6cd   :  { %4031 = vmatprep.subr.bf16.mxu1 %v4537_v34 }
 0x6d0   :  { %4032 = vmatpush3.bf16.msra.mxu1 %v4509_v52 }
 0x6d1   :  { %4033 = vmatprep.subr.bf16.mxu1 %v4537_v34 }
 0x6d4   :  { %4034 = vmatpush3.bf16.msra.mxu1 %v4510_v3 }
 0x6d5   :  { %4035 = vmatprep.subr.bf16.mxu1 %v4537_v34  ;;  %v3821_v34 = vld [vmem:[%s5800_s14] ss:$0 sm:$0xff] }
 0x6d8   :  { %4036 = vmatpush3.bf16.msra.mxu1 %v3373_v19 }
 0x754   :  { %v2862_v47 = vpop.f32.mrb[28].mxu0 }
 0x755   :  { %v3943_v57 = vpop.f32.mrb[29].mxu0 }
 0x756   :  { %v2774_v49 = vpop.f32.mrb[32].mxu1  ;;  %v2865_v58 = vpop.f32.mrb[30].mxu0 }
 0x757   :  { %v2863_v59 = vadd.f32 %v2862_v47, %v2774_v49  ;;  %v3923_v60 = vpop.f32.mrb[33].mxu1  ;;  %v3944_v62 = vpop.f32.mrb[31].mxu0 }
 0x758   :  { %v2777_v63 = vpop.f32.mrb[34].mxu1 }
 0x759   :  { %v3924_v20 = vpop.f32.mrb[35].mxu1 }
 0x774   :  { %v3077_v1 = vpop.f32.mrb[32].mxu0 }
 0x775   :  { %v3983_v36 = vpop.f32.mrb[33].mxu0 }
 0x776   :  { %v2969_v31 = vpop.f32.mrb[36].mxu1  ;;  %v3080_v43 = vpop.f32.mrb[34].mxu0 }
 0x777   :  { %v2975_v30 = vadd.f32 %v2969_v31, %v2863_v59  ;;  %v3963_v32 = vpop.f32.mrb[37].mxu1  ;;  %v3984_v5 = vpop.f32.mrb[35].mxu0 }
 0x778   :  { %v2972_v8 = vpop.f32.mrb[38].mxu1 }
 0x779   :  { %v3964_v37 = vpop.f32.mrb[39].mxu1  ;;  %v3083_v50 = vadd.f32 %v3077_v1, %v2975_v30 }
 0x796   :  { %v3184_v56 = vpop.f32.mrb[40].mxu1 }
 0x797   :  { %v3190_v17 = vadd.f32 %v3184_v56, %v3083_v50  ;;  %v4003_v7 = vpop.f32.mrb[41].mxu1 }
 0x798   :  { %v3187_v9 = vpop.f32.mrb[42].mxu1 }
 0x799   :  { %v3198_v33 = vadd.f32 %v3810_v6, %v3190_v17  ;;  %v4004_v12 = vpop.f32.mrb[43].mxu1 }
 0x79b   :  { %v3199_v13 = vmax.f32 %v3198_v33, 0.0 }
 0x79d   :  { %v3215_v16 = vpack.c.bf16 %v3199_v13, %v3199_v13 }
 0x79f   :  { %4022 = vmatmul.mubr.msk.bf16.vlgmr.msra.gmra.mrb[36].mxu0 %vm3268_vm13, %v3215_v16 }
 0x872   :  { %v3309_v21 = vpop.f32.mrb[36].mxu0 }
 0x873   :  { %v3310_v24 = vadd.f32 %v3811_v4, %v3309_v21  ;;  %v4023_v39 = vpop.f32.mrb[37].mxu0 }
 0x874   :  { %v3312_v25 = vpop.f32.mrb[38].mxu0 }
 0x875   :  { %v3315_v26 = vmax.f32 %v3310_v24, 0.0  ;;  %v4024_v27 = vpop.f32.mrb[39].mxu0 }
 0x877   :  { %v3327_v28 = vpack.c.bf16 %v3315_v26, %v3315_v26 }
 0x879   :  { %4038 = vmatmul.mubr.msk.bf16.vlgmr.msra.gmra.mrb[44].mxu1 %vm3368_vm14, %v3327_v28 }
 0x94c   :  { %v3409_v29 = vpop.f32.mrb[44].mxu1 }
 0x94d   :  { %v3410_v15 = vadd.f32 %v3821_v34, %v3409_v29  ;;  %v4039_v61 = vpop.f32.mrb[45].mxu1 }
 0x94e   :  { %v3412_v35 = vpop.f32.mrb[46].mxu1 }
 0x94f   :  { %v4040_v38 = vpop.f32.mrb[47].mxu1  ;;  %3416 = vst.msk [vmem:[#allocation4] sm:$0x3] %vm3415_vm8, %v3410_v15 }
 0x950   :  { %4523 = shalt.err (!%p4520_p4)
}
 0x951   :  { %s4524_s14 = scalar_lea.hbm %s5801_s15, 32 }
 0x952   :  { %p4525_p5 = scmp.ne.s32.totalorder %s5801_s15, %s4524_s14  ;;  %p4528_p6 = scmp.lt.u32.totalorder %s4524_s14, %s5801_s15 }
 0x954   :  { %p4530_p7 = pnand %p4528_p6, %p4525_p5 }
 0x956   :  { %4533 = shalt.err (!%p4530_p7)
}
 0x957   :  { %3426 = dma.vmem_to_hbm [thread:$0]  %s3424_s26, 32, %s5801_s15, [#allocation5]  }
 0x958   :  { %4534 = dma.done.wait [#allocation5], 32  }
 0x959   :  { %4535 = vsyncadd [#allocation5], 4294967264 }
 0x95a   :  { %3430 = vsyncpa [#allocation5], 1 }

</bundles_post_ra>
